<compile_context>
chip_gen: v6e
topology: v6e:2x2x1
jax: 0.10.0
libtpu: 0.0.40
codegen_flags: <defaults>
</compile_context>

<pallas_src>
import functools

import jax
import jax.numpy as jnp
from jax import lax
from jax.experimental import pallas as pl
from jax.experimental.pallas import tpu as pltpu


# ----------------------------- Pallas kernel --------------------------------

def bottleneck_kernel(x_ref, w1_ref, w2_ref, w3_ref,
                      s1_ref, b1_ref, s2_ref, b2_ref, s3_ref, b3_ref,
                      o_ref, y1_ref, *, Wp, H, W):
    """Fused conv1(1x1)+bn+relu -> conv2(3x3)+bn+relu -> conv3(1x1)+bn+res+relu.

    x_ref  : (1, Rp, Cin)   bf16, one image, spatially halo-padded, row-flattened
             (row r = i*Wp + j of the padded image), plus zero alignment tail.
    o_ref  : (1, RCp, Cout) bf16, rows k = h*Wp + w for interior positions (h, w)
             plus an alignment tail that the host crops.
    y1_ref : (Rp, Cmid)     bf16 VMEM scratch for the conv1 activation.
    """
    Rp = x_ref.shape[1]
    RCp = o_ref.shape[1]
    base = Wp + 1                       # flat offset of interior position (0, 0)

    xr = x_ref[0]                       # (Rp, Cin) bf16

    # ---- conv1 (1x1) + bn1 + relu, computed on all padded rows -------------
    y1 = jnp.dot(xr, w1_ref[...], preferred_element_type=jnp.float32)
    y1 = y1 * s1_ref[...] + b1_ref[...]

    # In-kernel halo mask: row r -> (ii, jj) of the padded image.  Uses an
    # exact f32 reciprocal floor-div (vector int div avoided; exact because
    # r < 2^22 and 0.5/Wp >> the f32 rounding error of the product).
    r = lax.broadcasted_iota(jnp.int32, (Rp, 1), 0).astype(jnp.float32)
    ii = jnp.floor((r + 0.5) * (1.0 / Wp))
    jj = r - ii * Wp
    interior = (ii >= 1.0) & (ii <= float(H)) & (jj >= 1.0) & (jj <= float(W))

    # ReLU fused with the halo zeroing so conv2 sees true zero padding.
    y1_ref[...] = jnp.where(interior, jnp.maximum(y1, 0.0),
                            0.0).astype(jnp.bfloat16)

    # ---- conv2 (3x3, stride 1, pad 1): 9 shifted matmuls, f32 accumulator --
    def tap_matmul(tap):
        dh, dw = tap // 3, tap % 3
        start = base + (dh - 1) * Wp + (dw - 1)          # static per tap
        patch = y1_ref[pl.ds(start, RCp), :]             # ref slice (no copy)
        return jnp.dot(patch, w2_ref[tap],
                       preferred_element_type=jnp.float32)

    acc = tap_matmul(0)                                   # init with first tap
    for tap in range(1, 9):
        acc = acc + tap_matmul(tap)
    y2 = jnp.maximum(acc * s2_ref[...] + b2_ref[...], 0.0).astype(jnp.bfloat16)

    # ---- conv3 (1x1) + bn3 + residual add + relu ----------------------------
    y3 = jnp.dot(y2, w3_ref[...], preferred_element_type=jnp.float32)
    res = x_ref[0, pl.ds(base, RCp), :].astype(jnp.float32)   # identity branch
    y3 = jnp.maximum(y3 * s3_ref[...] + b3_ref[...] + res, 0.0)
    o_ref[0] = y3.astype(o_ref.dtype)                          # bf16 writeback


# ----------------------------- glue / module --------------------------------

def _round_up(x, m):
    return (x + m - 1) // m * m


def fold_bn(gamma, beta, mean, var, eps=1e-5):
    scale = gamma / jnp.sqrt(var + eps)
    bias = beta - mean * scale
    return scale, bias


def bottleneck_forward(x_nchw, params):
    """Bottleneck with stride=1, downsample=None (so in_channel == 4*out_channel)."""
    N, Cin, H, W = x_nchw.shape
    Cmid = params["w1"].shape[1]
    Cout = params["w3"].shape[1]
    assert Cout == Cin, "stride=1 / downsample=None requires in_channel == 4*out_channel"

    LANE = 128
    Cin_p = _round_up(Cin, LANE)
    Cmid_p = _round_up(Cmid, LANE)
    Cout_p = Cin_p

    Hp, Wp = H + 2, W + 2
    R = Hp * Wp                        # padded rows per image
    RC = (H - 1) * Wp + W              # exact rows covering the interior
    RCp = _round_up(RC, 8)             # sublane-aligned output rows
    Rp = R + (RCp - RC)                # zero tail rows keep all tap slices in-bounds

    # NHWC, 1-pixel spatial halo, channel pad to lane width, flatten rows,
    # zero alignment tail, bf16.
    x = jnp.transpose(x_nchw, (0, 2, 3, 1))
    x = jnp.pad(x, ((0, 0), (1, 1), (1, 1), (0, Cin_p - Cin)))
    x = x.reshape(N, R, Cin_p)
    x = jnp.pad(x, ((0, 0), (0, Rp - R), (0, 0))).astype(jnp.bfloat16)

    # weights: pad channels to lane width, bf16.
    w1 = jnp.pad(params["w1"],
                 ((0, Cin_p - Cin), (0, Cmid_p - Cmid))).astype(jnp.bfloat16)
    w2 = jnp.pad(params["w2"],                                  # HWIO (3,3,Cmid,Cmid)
                 ((0, 0), (0, 0), (0, Cmid_p - Cmid), (0, Cmid_p - Cmid)))
    w2 = w2.reshape(9, Cmid_p, Cmid_p).astype(jnp.bfloat16)
    w3 = jnp.pad(params["w3"],
                 ((0, Cmid_p - Cmid), (0, Cout_p - Cout))).astype(jnp.bfloat16)

    def folded(bn, cp):
        s, b = fold_bn(*bn)
        pad = ((0, 0), (0, cp - s.shape[0]))
        return (jnp.pad(s.reshape(1, -1), pad).astype(jnp.float32),
                jnp.pad(b.reshape(1, -1), pad).astype(jnp.float32))

    s1, b1 = folded(params["bn1"], Cmid_p)
    s2, b2 = folded(params["bn2"], Cmid_p)
    s3, b3 = folded(params["bn3"], Cout_p)

    # Explicit scoped VMEM, sized from the actual blocks/scratch with headroom.
    bpe = 2  # bf16
    x_blk = Rp * Cin_p * bpe
    out_blk = RCp * Cout_p * bpe
    w_bytes = (Cin_p * Cmid_p + 9 * Cmid_p * Cmid_p + Cmid_p * Cout_p) * bpe
    scale_bytes = 6 * max(Cmid_p, Cout_p) * 4
    y1_scratch = Rp * Cmid_p * bpe
    f32_temps = (RCp * Cmid_p + 2 * RCp * Cout_p + Rp * Cmid_p) * 4
    vmem_bytes = 2 * (x_blk + out_blk + w_bytes + scale_bytes) + y1_scratch + f32_temps
    vmem_limit = int(min(max(int(1.5 * vmem_bytes) + (4 << 20), 16 << 20), 48 << 20))

    rep = lambda shape: pl.BlockSpec(shape, lambda n: (0,) * len(shape))

    out = pl.pallas_call(
        functools.partial(bottleneck_kernel, Wp=Wp, H=H, W=W),
        out_shape=jax.ShapeDtypeStruct((N, RCp, Cout_p), jnp.bfloat16),
        grid=(N,),
        in_specs=[
            pl.BlockSpec((1, Rp, Cin_p), lambda n: (n, 0, 0)),   # x (per image)
            rep((Cin_p, Cmid_p)),                                # w1
            rep((9, Cmid_p, Cmid_p)),                            # w2 (9 taps)
            rep((Cmid_p, Cout_p)),                               # w3
            rep((1, Cmid_p)), rep((1, Cmid_p)),                  # bn1 scale/bias
            rep((1, Cmid_p)), rep((1, Cmid_p)),                  # bn2 scale/bias
            rep((1, Cout_p)), rep((1, Cout_p)),                  # bn3 scale/bias
        ],
        out_specs=pl.BlockSpec((1, RCp, Cout_p), lambda n: (n, 0, 0)),
        scratch_shapes=[pltpu.VMEM((Rp, Cmid_p), jnp.bfloat16)],
        compiler_params=pltpu.CompilerParams(
            dimension_semantics=("parallel",),
            vmem_limit_bytes=vmem_limit),
    )(x, w1, w2, w3, s1, b1, s2, b2, s3, b3)

    # un-flatten: kernel row k = h*Wp + w -> (h, w); drop alignment tail,
    # pad to H*Wp, reshape, crop.  (In a chained ResNet this stays fused/flat.)
    out = out[:, :RC, :]
    out = jnp.pad(out, ((0, 0), (0, H * Wp - RC), (0, 0)))
    out = out.reshape(N, H, Wp, Cout_p)[:, :, :W, :Cout]
    # cast back to the module's external f32 contract (kernel writeback is bf16).
    return jnp.transpose(out, (0, 3, 1, 2)).astype(jnp.float32)


# ----------------------------- reference (pure JAX, f32) ---------------------

def bottleneck_reference(x_nchw, params):
    x = jnp.transpose(x_nchw, (0, 2, 3, 1))
    Cin = x.shape[-1]
    Cmid = params["w1"].shape[1]
    dn = lax.conv_dimension_numbers(x.shape, (1, 1, Cin, Cmid),
                                    ("NHWC", "HWIO", "NHWC"))

    def conv(inp, w_hwio, pad):
        return lax.conv_general_dilated(inp, w_hwio, (1, 1), pad,
                                        dimension_numbers=dn)

    def bn(inp, p):
        s, b = fold_bn(*p)
        return inp * s + b

    w1 = params["w1"].reshape(1, 1, Cin, Cmid)
    w2 = params["w2"]                                   # (3, 3, Cmid, Cmid) HWIO
    w3 = params["w3"].reshape(1, 1, Cmid, Cin)

    y = jnp.maximum(bn(conv(x, w1, "VALID"), params["bn1"]), 0.0)
    y = jnp.maximum(bn(conv(y, w2, [(1, 1), (1, 1)]), params["bn2"]), 0.0)
    y = jnp.maximum(bn(conv(y, w3, "VALID"), params["bn3"]) + x, 0.0)
    return jnp.transpose(y, (0, 3, 1, 2))


# --------------------------------- main --------------------------------------

if __name__ == "__main__":
    key = jax.random.PRNGKey(0)
    N, H, W = 2, 8, 8
    out_channel = 4
    expansion = 4
    in_channel = out_channel * expansion      # 16, so downsample=None is valid

    ks = jax.random.split(key, 16)

    w1 = 0.1 * jax.random.normal(ks[0], (in_channel, out_channel), jnp.float32)   # 1x1
    w2 = 0.1 * jax.random.normal(ks[1], (3, 3, out_channel, out_channel), jnp.float32)  # HWIO
    w3 = 0.1 * jax.random.normal(ks[2], (out_channel, in_channel), jnp.float32)   # 1x1

    def bn_params(kk, c):
        g = 1.0 + 0.1 * jax.random.normal(kk[0], (c,), jnp.float32)
        b = 0.1 * jax.random.normal(kk[1], (c,), jnp.float32)
        m = 0.1 * jax.random.normal(kk[2], (c,), jnp.float32)
        v = jnp.abs(1.0 + 0.1 * jax.random.normal(kk[3], (c,), jnp.float32))
        return (g, b, m, v)

    params = {
        "w1": w1, "w2": w2, "w3": w3,
        "bn1": bn_params(ks[3:7], out_channel),
        "bn2": bn_params(ks[7:11], out_channel),
        "bn3": bn_params(ks[11:15], in_channel),
    }

    x = jax.random.normal(ks[15], (N, in_channel, H, W), jnp.float32)

    fwd = jax.jit(bottleneck_forward)
    out = jax.block_until_ready(fwd(x, params))
    ref = jax.block_until_ready(bottleneck_reference(x, params))

    assert out.shape == (N, in_channel, H, W)
    max_err = float(jnp.max(jnp.abs(out - ref)))
    # bf16 activations/weights/output vs f32 reference -> tolerance covers quantization.
    assert jnp.allclose(out, ref, atol=5e-2, rtol=5e-2), (
        "mismatch vs JAX reference, max abs err = %f" % max_err)

    print("KERNEL_OK")
</pallas_src>

<mosaic_0001>
module attributes {stable_mosaic.version = 11 : i64} {
  func.func @bottleneck_kernel(%arg0: i32, %arg1: memref<1x102x128xbf16, #tpu.memory_space<vmem>>, %arg2: memref<128x128xbf16, #tpu.memory_space<vmem>>, %arg3: memref<9x128x128xbf16, #tpu.memory_space<vmem>>, %arg4: memref<128x128xbf16, #tpu.memory_space<vmem>>, %arg5: memref<1x128xf32, #tpu.memory_space<vmem>>, %arg6: memref<1x128xf32, #tpu.memory_space<vmem>>, %arg7: memref<1x128xf32, #tpu.memory_space<vmem>>, %arg8: memref<1x128xf32, #tpu.memory_space<vmem>>, %arg9: memref<1x128xf32, #tpu.memory_space<vmem>>, %arg10: memref<1x128xf32, #tpu.memory_space<vmem>>, %arg11: memref<1x80x128xbf16, #tpu.memory_space<vmem>>, %arg12: memref<102x128xbf16, #tpu.memory_space<vmem>>) attributes {dimension_semantics = [#tpu.dimension_semantics<parallel>], iteration_bounds = array<i64: 2>, scalar_prefetch = 0 : i64, scratch_operands = 1 : i64, tpu.core_type = #tpu.core_type<tc>, window_params = [{transform_indices = @transform_0, window_bounds = array<i64: 1, 102, 128>}, {pipeline_mode = #tpu.pipeline_mode<synchronous>, transform_indices = @transform_1, window_bounds = array<i64: 128, 128>}, {pipeline_mode = #tpu.pipeline_mode<synchronous>, transform_indices = @transform_2, window_bounds = array<i64: 9, 128, 128>}, {pipeline_mode = #tpu.pipeline_mode<synchronous>, transform_indices = @transform_3, window_bounds = array<i64: 128, 128>}, {pipeline_mode = #tpu.pipeline_mode<synchronous>, transform_indices = @transform_4, window_bounds = array<i64: 1, 128>}, {pipeline_mode = #tpu.pipeline_mode<synchronous>, transform_indices = @transform_5, window_bounds = array<i64: 1, 128>}, {pipeline_mode = #tpu.pipeline_mode<synchronous>, transform_indices = @transform_6, window_bounds = array<i64: 1, 128>}, {pipeline_mode = #tpu.pipeline_mode<synchronous>, transform_indices = @transform_7, window_bounds = array<i64: 1, 128>}, {pipeline_mode = #tpu.pipeline_mode<synchronous>, transform_indices = @transform_8, window_bounds = array<i64: 1, 128>}, {pipeline_mode = #tpu.pipeline_mode<synchronous>, transform_indices = @transform_9, window_bounds = array<i64: 1, 128>}, {transform_indices = @transform_10, window_bounds = array<i64: 1, 80, 128>}]} {
    %c0 = arith.constant 0 : index
    %c0_0 = arith.constant 0 : index
    %c0_1 = arith.constant 0 : index
    %0 = vector.load %arg1[%c0, %c0_0, %c0_1] : memref<1x102x128xbf16, #tpu.memory_space<vmem>>, vector<1x102x128xbf16>
    %1 = vector.shape_cast %0 : vector<1x102x128xbf16> to vector<102x128xbf16>
    %c0_2 = arith.constant 0 : index
    %c0_3 = arith.constant 0 : index
    %2 = vector.load %arg2[%c0_2, %c0_3] : memref<128x128xbf16, #tpu.memory_space<vmem>>, vector<128x128xbf16>
    %cst = arith.constant dense<0.000000e+00> : vector<102x128xf32>
    %3 = tpu.matmul %1, %2, %cst {dimension_numbers = #tpu.dot_dimension_numbers<[1], [0], [0], [1], [0, 0, 1, 1], [], []>} : vector<102x128xbf16>, vector<128x128xbf16>, vector<102x128xf32> -> vector<102x128xf32>
    %c0_4 = arith.constant 0 : index
    %c0_5 = arith.constant 0 : index
    %4 = vector.load %arg5[%c0_4, %c0_5] : memref<1x128xf32, #tpu.memory_space<vmem>>, vector<1x128xf32>
    %5 = vector.broadcast %4 : vector<1x128xf32> to vector<102x128xf32>
    %6 = arith.mulf %3, %5 : vector<102x128xf32>
    %c0_6 = arith.constant 0 : index
    %c0_7 = arith.constant 0 : index
    %7 = vector.load %arg6[%c0_6, %c0_7] : memref<1x128xf32, #tpu.memory_space<vmem>>, vector<1x128xf32>
    %8 = vector.broadcast %7 : vector<1x128xf32> to vector<102x128xf32>
    %9 = arith.addf %6, %8 : vector<102x128xf32>
    %10 = tpu.iota {dimensions = array<i32: 0>} : vector<102x1xi32>
    %11 = arith.sitofp %10 : vector<102x1xi32> to vector<102x1xf32>
    %cst_8 = arith.constant 5.000000e-01 : f32
    %12 = vector.broadcast %cst_8 : f32 to vector<102x1xf32>
    %13 = arith.addf %11, %12 : vector<102x1xf32>
    %cst_9 = arith.constant 1.000000e-01 : f32
    %14 = vector.broadcast %cst_9 : f32 to vector<102x1xf32>
    %15 = arith.mulf %13, %14 : vector<102x1xf32>
    %16 = math.floor %15 : vector<102x1xf32>
    %cst_10 = arith.constant 1.000000e+01 : f32
    %17 = vector.broadcast %cst_10 : f32 to vector<102x1xf32>
    %18 = arith.mulf %16, %17 : vector<102x1xf32>
    %19 = arith.subf %11, %18 : vector<102x1xf32>
    %cst_11 = arith.constant 1.000000e+00 : f32
    %20 = vector.broadcast %cst_11 : f32 to vector<102x1xf32>
    %21 = arith.cmpf oge, %16, %20 : vector<102x1xf32>
    %cst_12 = arith.constant 8.000000e+00 : f32
    %22 = vector.broadcast %cst_12 : f32 to vector<102x1xf32>
    %23 = arith.cmpf ole, %16, %22 : vector<102x1xf32>
    %24 = arith.andi %21, %23 : vector<102x1xi1>
    %cst_13 = arith.constant 1.000000e+00 : f32
    %25 = vector.broadcast %cst_13 : f32 to vector<102x1xf32>
    %26 = arith.cmpf oge, %19, %25 : vector<102x1xf32>
    %27 = arith.andi %24, %26 : vector<102x1xi1>
    %cst_14 = arith.constant 8.000000e+00 : f32
    %28 = vector.broadcast %cst_14 : f32 to vector<102x1xf32>
    %29 = arith.cmpf ole, %19, %28 : vector<102x1xf32>
    %30 = arith.andi %27, %29 : vector<102x1xi1>
    %cst_15 = arith.constant 0.000000e+00 : f32
    %31 = vector.broadcast %cst_15 : f32 to vector<102x128xf32>
    %32 = arith.maximumf %9, %31 : vector<102x128xf32>
    %cst_16 = arith.constant 0.000000e+00 : f32
    %33 = vector.shape_cast %30 : vector<102x1xi1> to vector<102x1xi1>
    %34 = vector.broadcast %33 : vector<102x1xi1> to vector<102x128xi1>
    %35 = vector.broadcast %cst_16 : f32 to vector<102x128xf32>
    %36 = arith.select %34, %32, %35 : vector<102x128xi1>, vector<102x128xf32>
    %37 = arith.truncf %36 : vector<102x128xf32> to vector<102x128xbf16>
    %c0_17 = arith.constant 0 : index
    %c0_18 = arith.constant 0 : index
    %38 = vector.load %arg12[%c0_17, %c0_18] : memref<102x128xbf16, #tpu.memory_space<vmem>>, vector<102x128xbf16>
    tpu.vector_store %arg12[%c0_17, %c0_18], %37 {strides = array<i32>} : memref<102x128xbf16, #tpu.memory_space<vmem>>, vector<102x128xbf16>,
    %c0_19 = arith.constant 0 : index
    %c0_20 = arith.constant 0 : index
    %39 = vector.load %arg12[%c0_19, %c0_20] : memref<102x128xbf16, #tpu.memory_space<vmem>>, vector<80x128xbf16>
    %c0_21 = arith.constant 0 : index
    %c0_22 = arith.constant 0 : index
    %c0_23 = arith.constant 0 : index
    %40 = vector.load %arg3[%c0_21, %c0_22, %c0_23] : memref<9x128x128xbf16, #tpu.memory_space<vmem>>, vector<1x128x128xbf16>
    %41 = vector.shape_cast %40 : vector<1x128x128xbf16> to vector<128x128xbf16>
    %cst_24 = arith.constant dense<0.000000e+00> : vector<80x128xf32>
    %42 = tpu.matmul %39, %41, %cst_24 {dimension_numbers = #tpu.dot_dimension_numbers<[1], [0], [0], [1], [0, 0, 1, 1], [], []>} : vector<80x128xbf16>, vector<128x128xbf16>, vector<80x128xf32> -> vector<80x128xf32>
    %c1 = arith.constant 1 : index
    %c0_25 = arith.constant 0 : index
    %43 = vector.load %arg12[%c1, %c0_25] : memref<102x128xbf16, #tpu.memory_space<vmem>>, vector<80x128xbf16>
    %c1_26 = arith.constant 1 : index
    %c0_27 = arith.constant 0 : index
    %c0_28 = arith.constant 0 : index
    %44 = vector.load %arg3[%c1_26, %c0_27, %c0_28] : memref<9x128x128xbf16, #tpu.memory_space<vmem>>, vector<1x128x128xbf16>
    %45 = vector.shape_cast %44 : vector<1x128x128xbf16> to vector<128x128xbf16>
    %cst_29 = arith.constant dense<0.000000e+00> : vector<80x128xf32>
    %46 = tpu.matmul %43, %45, %cst_29 {dimension_numbers = #tpu.dot_dimension_numbers<[1], [0], [0], [1], [0, 0, 1, 1], [], []>} : vector<80x128xbf16>, vector<128x128xbf16>, vector<80x128xf32> -> vector<80x128xf32>
    %47 = arith.addf %42, %46 : vector<80x128xf32>
    %c2 = arith.constant 2 : index
    %c0_30 = arith.constant 0 : index
    %48 = vector.load %arg12[%c2, %c0_30] : memref<102x128xbf16, #tpu.memory_space<vmem>>, vector<80x128xbf16>
    %c2_31 = arith.constant 2 : index
    %c0_32 = arith.constant 0 : index
    %c0_33 = arith.constant 0 : index
    %49 = vector.load %arg3[%c2_31, %c0_32, %c0_33] : memref<9x128x128xbf16, #tpu.memory_space<vmem>>, vector<1x128x128xbf16>
    %50 = vector.shape_cast %49 : vector<1x128x128xbf16> to vector<128x128xbf16>
    %cst_34 = arith.constant dense<0.000000e+00> : vector<80x128xf32>
    %51 = tpu.matmul %48, %50, %cst_34 {dimension_numbers = #tpu.dot_dimension_numbers<[1], [0], [0], [1], [0, 0, 1, 1], [], []>} : vector<80x128xbf16>, vector<128x128xbf16>, vector<80x128xf32> -> vector<80x128xf32>
    %52 = arith.addf %47, %51 : vector<80x128xf32>
    %c10 = arith.constant 10 : index
    %c0_35 = arith.constant 0 : index
    %53 = vector.load %arg12[%c10, %c0_35] : memref<102x128xbf16, #tpu.memory_space<vmem>>, vector<80x128xbf16>
    %c3 = arith.constant 3 : index
    %c0_36 = arith.constant 0 : index
    %c0_37 = arith.constant 0 : index
    %54 = vector.load %arg3[%c3, %c0_36, %c0_37] : memref<9x128x128xbf16, #tpu.memory_space<vmem>>, vector<1x128x128xbf16>
    %55 = vector.shape_cast %54 : vector<1x128x128xbf16> to vector<128x128xbf16>
    %cst_38 = arith.constant dense<0.000000e+00> : vector<80x128xf32>
    %56 = tpu.matmul %53, %55, %cst_38 {dimension_numbers = #tpu.dot_dimension_numbers<[1], [0], [0], [1], [0, 0, 1, 1], [], []>} : vector<80x128xbf16>, vector<128x128xbf16>, vector<80x128xf32> -> vector<80x128xf32>
    %57 = arith.addf %52, %56 : vector<80x128xf32>
    %c11 = arith.constant 11 : index
    %c0_39 = arith.constant 0 : index
    %58 = vector.load %arg12[%c11, %c0_39] : memref<102x128xbf16, #tpu.memory_space<vmem>>, vector<80x128xbf16>
    %c4 = arith.constant 4 : index
    %c0_40 = arith.constant 0 : index
    %c0_41 = arith.constant 0 : index
    %59 = vector.load %arg3[%c4, %c0_40, %c0_41] : memref<9x128x128xbf16, #tpu.memory_space<vmem>>, vector<1x128x128xbf16>
    %60 = vector.shape_cast %59 : vector<1x128x128xbf16> to vector<128x128xbf16>
    %cst_42 = arith.constant dense<0.000000e+00> : vector<80x128xf32>
    %61 = tpu.matmul %58, %60, %cst_42 {dimension_numbers = #tpu.dot_dimension_numbers<[1], [0], [0], [1], [0, 0, 1, 1], [], []>} : vector<80x128xbf16>, vector<128x128xbf16>, vector<80x128xf32> -> vector<80x128xf32>
    %62 = arith.addf %57, %61 : vector<80x128xf32>
    %c12 = arith.constant 12 : index
    %c0_43 = arith.constant 0 : index
    %63 = vector.load %arg12[%c12, %c0_43] : memref<102x128xbf16, #tpu.memory_space<vmem>>, vector<80x128xbf16>
    %c5 = arith.constant 5 : index
    %c0_44 = arith.constant 0 : index
    %c0_45 = arith.constant 0 : index
    %64 = vector.load %arg3[%c5, %c0_44, %c0_45] : memref<9x128x128xbf16, #tpu.memory_space<vmem>>, vector<1x128x128xbf16>
    %65 = vector.shape_cast %64 : vector<1x128x128xbf16> to vector<128x128xbf16>
    %cst_46 = arith.constant dense<0.000000e+00> : vector<80x128xf32>
    %66 = tpu.matmul %63, %65, %cst_46 {dimension_numbers = #tpu.dot_dimension_numbers<[1], [0], [0], [1], [0, 0, 1, 1], [], []>} : vector<80x128xbf16>, vector<128x128xbf16>, vector<80x128xf32> -> vector<80x128xf32>
    %67 = arith.addf %62, %66 : vector<80x128xf32>
    %c20 = arith.constant 20 : index
    %c0_47 = arith.constant 0 : index
    %68 = vector.load %arg12[%c20, %c0_47] : memref<102x128xbf16, #tpu.memory_space<vmem>>, vector<80x128xbf16>
    %c6 = arith.constant 6 : index
    %c0_48 = arith.constant 0 : index
    %c0_49 = arith.constant 0 : index
    %69 = vector.load %arg3[%c6, %c0_48, %c0_49] : memref<9x128x128xbf16, #tpu.memory_space<vmem>>, vector<1x128x128xbf16>
    %70 = vector.shape_cast %69 : vector<1x128x128xbf16> to vector<128x128xbf16>
    %cst_50 = arith.constant dense<0.000000e+00> : vector<80x128xf32>
    %71 = tpu.matmul %68, %70, %cst_50 {dimension_numbers = #tpu.dot_dimension_numbers<[1], [0], [0], [1], [0, 0, 1, 1], [], []>} : vector<80x128xbf16>, vector<128x128xbf16>, vector<80x128xf32> -> vector<80x128xf32>
    %72 = arith.addf %67, %71 : vector<80x128xf32>
    %c21 = arith.constant 21 : index
    %c0_51 = arith.constant 0 : index
    %73 = vector.load %arg12[%c21, %c0_51] : memref<102x128xbf16, #tpu.memory_space<vmem>>, vector<80x128xbf16>
    %c7 = arith.constant 7 : index
    %c0_52 = arith.constant 0 : index
    %c0_53 = arith.constant 0 : index
    %74 = vector.load %arg3[%c7, %c0_52, %c0_53] : memref<9x128x128xbf16, #tpu.memory_space<vmem>>, vector<1x128x128xbf16>
    %75 = vector.shape_cast %74 : vector<1x128x128xbf16> to vector<128x128xbf16>
    %cst_54 = arith.constant dense<0.000000e+00> : vector<80x128xf32>
    %76 = tpu.matmul %73, %75, %cst_54 {dimension_numbers = #tpu.dot_dimension_numbers<[1], [0], [0], [1], [0, 0, 1, 1], [], []>} : vector<80x128xbf16>, vector<128x128xbf16>, vector<80x128xf32> -> vector<80x128xf32>
    %77 = arith.addf %72, %76 : vector<80x128xf32>
    %c22 = arith.constant 22 : index
    %c0_55 = arith.constant 0 : index
    %78 = vector.load %arg12[%c22, %c0_55] : memref<102x128xbf16, #tpu.memory_space<vmem>>, vector<80x128xbf16>
    %c8 = arith.constant 8 : index
    %c0_56 = arith.constant 0 : index
    %c0_57 = arith.constant 0 : index
    %79 = vector.load %arg3[%c8, %c0_56, %c0_57] : memref<9x128x128xbf16, #tpu.memory_space<vmem>>, vector<1x128x128xbf16>
    %80 = vector.shape_cast %79 : vector<1x128x128xbf16> to vector<128x128xbf16>
    %cst_58 = arith.constant dense<0.000000e+00> : vector<80x128xf32>
    %81 = tpu.matmul %78, %80, %cst_58 {dimension_numbers = #tpu.dot_dimension_numbers<[1], [0], [0], [1], [0, 0, 1, 1], [], []>} : vector<80x128xbf16>, vector<128x128xbf16>, vector<80x128xf32> -> vector<80x128xf32>
    %82 = arith.addf %77, %81 : vector<80x128xf32>
    %c0_59 = arith.constant 0 : index
    %c0_60 = arith.constant 0 : index
    %83 = vector.load %arg7[%c0_59, %c0_60] : memref<1x128xf32, #tpu.memory_space<vmem>>, vector<1x128xf32>
    %84 = vector.broadcast %83 : vector<1x128xf32> to vector<80x128xf32>
    %85 = arith.mulf %82, %84 : vector<80x128xf32>
    %c0_61 = arith.constant 0 : index
    %c0_62 = arith.constant 0 : index
    %86 = vector.load %arg8[%c0_61, %c0_62] : memref<1x128xf32, #tpu.memory_space<vmem>>, vector<1x128xf32>
    %87 = vector.broadcast %86 : vector<1x128xf32> to vector<80x128xf32>
    %88 = arith.addf %85, %87 : vector<80x128xf32>
    %cst_63 = arith.constant 0.000000e+00 : f32
    %89 = vector.broadcast %cst_63 : f32 to vector<80x128xf32>
    %90 = arith.maximumf %88, %89 : vector<80x128xf32>
    %91 = arith.truncf %90 : vector<80x128xf32> to vector<80x128xbf16>
    %c0_64 = arith.constant 0 : index
    %c0_65 = arith.constant 0 : index
    %92 = vector.load %arg4[%c0_64, %c0_65] : memref<128x128xbf16, #tpu.memory_space<vmem>>, vector<128x128xbf16>
    %cst_66 = arith.constant dense<0.000000e+00> : vector<80x128xf32>
    %93 = tpu.matmul %91, %92, %cst_66 {dimension_numbers = #tpu.dot_dimension_numbers<[1], [0], [0], [1], [0, 0, 1, 1], [], []>} : vector<80x128xbf16>, vector<128x128xbf16>, vector<80x128xf32> -> vector<80x128xf32>
    %c0_67 = arith.constant 0 : index
    %c11_68 = arith.constant 11 : index
    %c0_69 = arith.constant 0 : index
    %94 = vector.load %arg1[%c0_67, %c11_68, %c0_69] : memref<1x102x128xbf16, #tpu.memory_space<vmem>>, vector<1x80x128xbf16>
    %95 = vector.shape_cast %94 : vector<1x80x128xbf16> to vector<80x128xbf16>
    %96 = arith.extf %95 : vector<80x128xbf16> to vector<80x128xf32>
    %c0_70 = arith.constant 0 : index
    %c0_71 = arith.constant 0 : index
    %97 = vector.load %arg9[%c0_70, %c0_71] : memref<1x128xf32, #tpu.memory_space<vmem>>, vector<1x128xf32>
    %98 = vector.broadcast %97 : vector<1x128xf32> to vector<80x128xf32>
    %99 = arith.mulf %93, %98 : vector<80x128xf32>
    %c0_72 = arith.constant 0 : index
    %c0_73 = arith.constant 0 : index
    %100 = vector.load %arg10[%c0_72, %c0_73] : memref<1x128xf32, #tpu.memory_space<vmem>>, vector<1x128xf32>
    %101 = vector.broadcast %100 : vector<1x128xf32> to vector<80x128xf32>
    %102 = arith.addf %99, %101 : vector<80x128xf32>
    %103 = arith.addf %102, %96 : vector<80x128xf32>
    %cst_74 = arith.constant 0.000000e+00 : f32
    %104 = vector.broadcast %cst_74 : f32 to vector<80x128xf32>
    %105 = arith.maximumf %103, %104 : vector<80x128xf32>
    %106 = arith.truncf %105 : vector<80x128xf32> to vector<80x128xbf16>
    %c0_75 = arith.constant 0 : index
    %c0_76 = arith.constant 0 : index
    %c0_77 = arith.constant 0 : index
    %107 = vector.load %arg11[%c0_75, %c0_76, %c0_77] : memref<1x80x128xbf16, #tpu.memory_space<vmem>>, vector<1x80x128xbf16>
    %108 = vector.shape_cast %107 : vector<1x80x128xbf16> to vector<80x128xbf16>
    %109 = vector.shape_cast %106 : vector<80x128xbf16> to vector<1x80x128xbf16>
    tpu.vector_store %arg11[%c0_75, %c0_76, %c0_77], %109 {strides = array<i32>} : memref<1x80x128xbf16, #tpu.memory_space<vmem>>, vector<1x80x128xbf16>,
    return
  }
  func.func @transform_0(%arg0: i32) -> (i32, i32, i32) {
    %c0_i32 = arith.constant 0 : i32
    %c0_i32_0 = arith.constant 0 : i32
    %c0_i32_1 = arith.constant 0 : i32
    return %arg0, %c0_i32, %c0_i32_0 : i32, i32, i32
  }
  func.func @transform_1(%arg0: i32) -> (i32, i32) {
    %c0_i32 = arith.constant 0 : i32
    %c0_i32_0 = arith.constant 0 : i32
    %c0_i32_1 = arith.constant 0 : i32
    return %c0_i32, %c0_i32_0 : i32, i32
  }
  func.func @transform_2(%arg0: i32) -> (i32, i32, i32) {
    %c0_i32 = arith.constant 0 : i32
    %c0_i32_0 = arith.constant 0 : i32
    %c0_i32_1 = arith.constant 0 : i32
    %c0_i32_2 = arith.constant 0 : i32
    return %c0_i32, %c0_i32_0, %c0_i32_1 : i32, i32, i32
  }
  func.func @transform_3(%arg0: i32) -> (i32, i32) {
    %c0_i32 = arith.constant 0 : i32
    %c0_i32_0 = arith.constant 0 : i32
    %c0_i32_1 = arith.constant 0 : i32
    return %c0_i32, %c0_i32_0 : i32, i32
  }
  func.func @transform_4(%arg0: i32) -> (i32, i32) {
    %c0_i32 = arith.constant 0 : i32
    %c0_i32_0 = arith.constant 0 : i32
    %c0_i32_1 = arith.constant 0 : i32
    return %c0_i32, %c0_i32_0 : i32, i32
  }
  func.func @transform_5(%arg0: i32) -> (i32, i32) {
    %c0_i32 = arith.constant 0 : i32
    %c0_i32_0 = arith.constant 0 : i32
    %c0_i32_1 = arith.constant 0 : i32
    return %c0_i32, %c0_i32_0 : i32, i32
  }
  func.func @transform_6(%arg0: i32) -> (i32, i32) {
    %c0_i32 = arith.constant 0 : i32
    %c0_i32_0 = arith.constant 0 : i32
    %c0_i32_1 = arith.constant 0 : i32
    return %c0_i32, %c0_i32_0 : i32, i32
  }
  func.func @transform_7(%arg0: i32) -> (i32, i32) {
    %c0_i32 = arith.constant 0 : i32
    %c0_i32_0 = arith.constant 0 : i32
    %c0_i32_1 = arith.constant 0 : i32
    return %c0_i32, %c0_i32_0 : i32, i32
  }
  func.func @transform_8(%arg0: i32) -> (i32, i32) {
    %c0_i32 = arith.constant 0 : i32
    %c0_i32_0 = arith.constant 0 : i32
    %c0_i32_1 = arith.constant 0 : i32
    return %c0_i32, %c0_i32_0 : i32, i32
  }
  func.func @transform_9(%arg0: i32) -> (i32, i32) {
    %c0_i32 = arith.constant 0 : i32
    %c0_i32_0 = arith.constant 0 : i32
    %c0_i32_1 = arith.constant 0 : i32
    return %c0_i32, %c0_i32_0 : i32, i32
  }
  func.func @transform_10(%arg0: i32) -> (i32, i32, i32) {
    %c0_i32 = arith.constant 0 : i32
    %c0_i32_0 = arith.constant 0 : i32
    %c0_i32_1 = arith.constant 0 : i32
    return %arg0, %c0_i32, %c0_i32_0 : i32, i32, i32
  }
}

</mosaic_0001>

<bundles_post_ra>
// kernel: bottleneck_forward.1
= control target key start
LH: loop header
LB: loop body
LE: loop exit
PB: predicated region body
PF: predicated region fallthrough
CT: control target
= control target key end

     0   :  { %s4172_s13 = smov 0   ;;  %s5574_s0 = inlined_call_operand.vmem [shape: bf16[2,102,128], index: 0, kind: input, shape index: {}]   ;;  %s5575_s1 = inlined_call_operand.vmem [shape: bf16[128,128], index: 1, kind: input, shape index: {}]   ;;  %s5576_s2 = inlined_call_operand.vmem [shape: bf16[9,128,128], index: 2, kind: input, shape index: {}]   ;;  %s5577_s3 = inlined_call_operand.vmem [shape: bf16[128,128], index: 3, kind: input, shape index: {}]   ;;  %s5578_s4 = inlined_call_operand.vmem [shape: f32[1,128], index: 4, kind: input, shape index: {}]   ;;  %s5579_s5 = inlined_call_operand.vmem [shape: f32[1,128], index: 5, kind: input, shape index: {}]   ;;  %s5580_s6 = inlined_call_operand.vmem [shape: f32[1,128], index: 6, kind: input, shape index: {}]   ;;  %s5581_s7 = inlined_call_operand.vmem [shape: f32[1,128], index: 7, kind: input, shape index: {}]   ;;  %s5582_s8 = inlined_call_operand.vmem [shape: f32[1,128], index: 8, kind: input, shape index: {}]   ;;  %s5583_s9 = inlined_call_operand.vmem [shape: f32[1,128], index: 9, kind: input, shape index: {}]   ;;  %s5584_s10 = inlined_call_operand.vmem [shape: bf16[2,80,128], index: 10, kind: output, shape index: {}]  }
   0x1 LB: > { %s3021_s14 = sadd.s32 4294967295, %s4113_s13   ;;  %p3025_p0 = scmp.ge.s32.totalorder %s4113_s13, 1  ;;  %s4113_s13 = sphi %s4172_s13, %s20_s13  }
   0x2   : > { %p312_p1 = scmp.lt.s32.totalorder %s4113_s13, 3 }
   0x4   : > { %p313_p2 = pnand %p3025_p0, %p312_p1 }
   0x5   : > { %p350_p3 = scmp.lt.s32.totalorder (!%p313_p2), %s3021_s14, 1 }
   0x6   : > { %316 = sbr.rel (%p313_p2) target bundleno = 880 (0x370), region = 60 }
   0xb   : > { %v3989_v0 = vld [vmem:[%s5575_s1 + $0x38] sm:$0xff]   ;;  %v4115_v1 = vmov 0.0   ;;  %v3990_v2 = vld [vmem:[%s5575_s1 + $0x30] sm:$0xff]   ;;  %vm5585_vm0 = vmmov 0   ;;  %s5655_s14 = smov (!%p350_p3, %s3021_s14), 1  ;;  %v3991_v3 = vld [vmem:[%s5575_s1 + $0x28] sm:$0xff]   ;;  %v606_v32 = vlaneseq }
   0xc   : > { %3557 = vmatprep.subr.bf16.mxu0 %v4115_v1  ;;  %3601 = vmatprep.subr.bf16.mxu1 %v4115_v1  ;;  %s3977_s21 = smul.u32 52, %s5655_s14  ;;  %v3992_v4 = vld [vmem:[%s5575_s1 + $0x20] sm:$0xff]   ;;  %v3993_v5 = vld [vmem:[%s5575_s1 + $0x18] sm:$0xff]   ;;  %v3994_v6 = vld [vmem:[%s5575_s1 + $0x10] sm:$0xff]  }
   0xd   : > { %3558 = vmatpush3.bf16.msra.mxu0 %v3989_v0  ;;  %3573 = vmatprep.mubr.msk.bf16.mxu0 %vm5585_vm0, %v4115_v1  ;;  %v3995_v7 = vld [vmem:[%s5575_s1 + $0x8] sm:$0xff]   ;;  %v3996_v8 = vld [vmem:[%s5575_s1] sm:$0xff]   ;;  %v4004_v16 = vld [vmem:[%s5576_s2 + $0xb8] sm:$0xff]   ;;  %v4311_v33 = vshrl.u32 %v606_v32, 7  ;;  %s3978_s19 = smul.u32 40, %s5655_s14 }
   0xe   : > { %3559 = vmatprep.subr.bf16.mxu0 %v4115_v1  ;;  %3617 = vmatprep.mubr.msk.bf16.mxu1 %vm5585_vm0, %v4115_v1  ;;  %s4203_s24 = scalar_lea.vmem %s5574_s0, %s3977_s21  ;;  %v4005_v17 = vld [vmem:[%s5576_s2 + $0x78] sm:$0xff]   ;;  %v4006_v18 = vld [vmem:[%s5576_s2 + $0xb0] sm:$0xff]   ;;  %v4008_v20 = vld [vmem:[%s5576_s2 + $0xa8] sm:$0xff]  }
   0xf   : > { %v3997_v9 = vld [vmem:[%s4203_s24] sm:$0xff]   ;;  %v3998_v10 = vld [vmem:[%s4203_s24 + $0x8] sm:$0xff]   ;;  %v3999_v11 = vld [vmem:[%s4203_s24 + $0x10] sm:$0xff]   ;;  %3602 = vmatpush3.bf16.msra.mxu1 %v4005_v17  ;;  %v608_v34 = vadd.s32 8, %v4311_v33  ;;  %v620_v35 = vcvt.s32.f32 %v4311_v33  ;;  %v609_v37 = vadd.s32 16, %v4311_v33  ;;  %v610_v39 = vadd.s32 24, %v4311_v33  ;;  %s5539_s22 = scalar_lea.vmem %s5584_s10, %s3978_s19 }
  0x10   : > { %v4000_v12 = vld [vmem:[%s4203_s24 + $0x18] sm:$0xff]   ;;  %v4001_v13 = vld [vmem:[%s4203_s24 + $0x20] sm:$0xff]   ;;  %v4002_v14 = vld [vmem:[%s4203_s24 + $0x28] sm:$0xff]   ;;  %3603 = vmatprep.subr.bf16.mxu1 %v4115_v1  ;;  %v4318_v44 = vadd.s32 32, %v4311_v33  ;;  %v4322_v50 = vadd.s32 40, %v4311_v33  ;;  %v4325_v53 = vadd.s32 48, %v4311_v33 }
  0x11   : > { %3560 = vmatpush3.bf16.msra.mxu0 %v3990_v2  ;;  %v4003_v15 = vld [vmem:[%s4203_s24 + $0x30] ss:$0 sps:$4 sm:$0x77]   ;;  %v4009_v21 = vld [vmem:[%s5576_s2 + $0x68] sm:$0xff]   ;;  %v4010_v22 = vld [vmem:[%s5576_s2 + $0xa0] sm:$0xff]   ;;  %v621_v36 = vcvt.s32.f32 %v608_v34  ;;  %v633_v38 = vadd.f32 0.5, %v620_v35  ;;  %v622_v41 = vcvt.s32.f32 %v609_v37  ;;  %v623_v43 = vcvt.s32.f32 %v610_v39 }
  0x12   : > { %3561 = vmatprep.subr.bf16.mxu0 %v4115_v1  ;;  %v4007_v19 = vld [vmem:[%s5576_s2 + $0x70] sm:$0xff]   ;;  %v4011_v23 = vld [vmem:[%s5576_s2 + $0x60] sm:$0xff]   ;;  %v4012_v24 = vld [vmem:[%s5576_s2 + $0x98] sm:$0xff]   ;;  %v624_v49 = vcvt.s32.f32 %v4318_v44  ;;  %v625_v57 = vcvt.s32.f32 %v4322_v50  ;;  %v4331_v59 = vadd.s32 56, %v4311_v33  ;;  %v626_v61 = vcvt.s32.f32 %v4325_v53 }
  0x13   : > { %3604 = vmatpush3.bf16.msra.mxu1 %v4007_v19  ;;  %v4013_v25 = vld [vmem:[%s5576_s2 + $0x58] sm:$0xff]   ;;  %v4014_v26 = vld [vmem:[%s5576_s2 + $0x90] sm:$0xff]   ;;  %v4016_v28 = vld [vmem:[%s5576_s2 + $0x88] sm:$0xff]   ;;  %v634_v40 = vadd.f32 0.5, %v621_v36  ;;  %v646_v42 = vmul.f32 0.1, %v633_v38 }
  0x14   : > { %3605 = vmatprep.subr.bf16.mxu1 %v4115_v1  ;;  %v4015_v27 = vld [vmem:[%s5576_s2 + $0x50] sm:$0xff]   ;;  %v4017_v29 = vld [vmem:[%s5576_s2 + $0x48] sm:$0xff]   ;;  %v4018_v30 = vld [vmem:[%s5576_s2 + $0x80] sm:$0xff]   ;;  %v635_v46 = vadd.f32 0.5, %v622_v41  ;;  %v636_v48 = vadd.f32 0.5, %v623_v43  ;;  %v637_v56 = vadd.f32 0.5, %v624_v49 }
  0x15   : > { %3562 = vmatpush3.bf16.msra.mxu0 %v3991_v3  ;;  %v4019_v31 = vld [vmem:[%s5576_s2 + $0x40] sm:$0xff]   ;;  %v647_v45 = vmul.f32 0.1, %v634_v40  ;;  %v659_v47 = vfloor.f32 %v646_v42  ;;  %v638_v2 = vadd.f32 0.5, %v625_v57 }
  0x16   : > { %3563 = vmatprep.subr.bf16.mxu0 %v4115_v1  ;;  %v648_v52 = vmul.f32 0.1, %v635_v46  ;;  %v649_v55 = vmul.f32 0.1, %v636_v48  ;;  %v650_v0 = vmul.f32 0.1, %v637_v56 }
  0x17   : > { %3606 = vmatpush3.bf16.msra.mxu1 %v4009_v21  ;;  %v660_v51 = vfloor.f32 %v647_v45  ;;  %v672_v54 = vmul.f32 10.0, %v659_v47  ;;  %vm698_vm1 = vcmp.ge.f32.partialorder %v659_v47, 1.0  ;;  %vm711_vm2 = vcmp.le.f32.partialorder %v659_v47, 8.0 }
  0x18   : > { %3607 = vmatprep.subr.bf16.mxu1 %v4115_v1  ;;  %v661_v60 = vfloor.f32 %v648_v52  ;;  %v662_v63 = vfloor.f32 %v649_v55  ;;  %vm724_vm5 = vmand %vm698_vm1, %vm711_vm2  ;;  %v4407_v47 = vadd.s32 80, %v4311_v33 }
  0x19   : > { %3564 = vmatpush3.bf16.msra.mxu0 %v3992_v4  ;;  %v673_v58 = vmul.f32 10.0, %v660_v51  ;;  %v685_v62 = vsub.f32 %v620_v35, %v672_v54  ;;  %v627_v4 = vcvt.s32.f32 %v4331_v59  ;;  %vm699_vm3 = vcmp.ge.f32.partialorder %v660_v51, 1.0 }
  0x1a   : > { %3565 = vmatprep.subr.bf16.mxu0 %v4115_v1  ;;  %vm712_vm4 = vcmp.le.f32.partialorder %v660_v51, 8.0  ;;  %vm700_vm13 = vcmp.ge.f32.partialorder %v661_v60, 1.0  ;;  %vm713_vm14 = vcmp.le.f32.partialorder %v661_v60, 8.0  ;;  %vm701_vm1 = vcmp.ge.f32.partialorder %v662_v63, 1.0 }
  0x1b   : > { %3608 = vmatpush3.bf16.msra.mxu1 %v4011_v23  ;;  %v686_v3 = vsub.f32 %v621_v36, %v673_v58  ;;  %vm737_vm6 = vcmp.ge.f32.partialorder %v685_v62, 1.0  ;;  %vm725_vm7 = vmand %vm699_vm3, %vm712_vm4  ;;  %vm763_vm10 = vcmp.le.f32.partialorder %v685_v62, 8.0  ;;  %vm714_vm2 = vcmp.le.f32.partialorder %v662_v63, 8.0 }
  0x1c   : > { %3609 = vmatprep.subr.bf16.mxu1 %v4115_v1  ;;  %vm750_vm9 = vmand %vm724_vm5, %vm737_vm6 }
  0x1d   : > { %3566 = vmatpush3.bf16.msra.mxu0 %v3993_v5  ;;  %v4340_v5 = vld [vmem:[%s5578_s4] ss:$0 sm:$0xff]  ;;  %vm738_vm8 = vcmp.ge.f32.partialorder %v686_v3, 1.0  ;;  %vm764_vm12 = vcmp.le.f32.partialorder %v686_v3, 8.0  ;;  %vm4370_vm15 = vmand %vm750_vm9, %vm763_vm10  ;;  %v630_v3 = vcvt.s32.f32 %v4407_v47 }
  0x1e   : > { %3567 = vmatprep.subr.bf16.mxu0 %v4115_v1  ;;  %vm4362_vm11 = vmand %vm725_vm7, %vm738_vm8 }
  0x1f   : > { %3610 = vmatpush3.bf16.msra.mxu1 %v4013_v25  ;;  %vm4381_vm3 = vmand %vm4362_vm11, %vm764_vm12 }
  0x20   : > { %3611 = vmatprep.subr.bf16.mxu1 %v4115_v1  ;;  %vm4388_vm5 = vmand %vm700_vm13, %vm713_vm14 }
  0x21   : > { %3568 = vmatpush3.bf16.msra.mxu0 %v3994_v6  ;;  %v4343_v6 = vadd.s32 64, %v4311_v33  ;;  %vm4400_vm8 = vmand %vm701_vm1, %vm714_vm2 }
  0x22   : > { %3569 = vmatprep.subr.bf16.mxu0 %v4115_v1 }
  0x23   : > { %3612 = vmatpush3.bf16.msra.mxu1 %v4015_v27  ;;  %v628_v17 = vcvt.s32.f32 %v4343_v6 }
  0x24   : > { %3613 = vmatprep.subr.bf16.mxu1 %v4115_v1 }
  0x25   : > { %3570 = vmatpush3.bf16.msra.mxu0 %v3995_v7  ;;  %v674_v7 = vmul.f32 10.0, %v661_v60 }
  0x26   : > { %3571 = vmatprep.subr.bf16.mxu0 %v4115_v1 }
  0x27   : > { %3614 = vmatpush3.bf16.msra.mxu1 %v4017_v29 }
  0x28   : > { %3615 = vmatprep.subr.bf16.mxu1 %v4115_v1 }
  0x29   : > { %3572 = vmatpush3.bf16.msra.mxu0 %v3996_v8  ;;  %v639_v8 = vadd.f32 0.5, %v626_v61 }
  0x2a   : > { %3673 = vmatprep.subr.bf16.mxu0 %v4115_v1 }
  0x2b   : > { %3616 = vmatpush3.bf16.msra.mxu1 %v4019_v31  ;;  %v652_v21 = vmul.f32 0.1, %v639_v8  ;;  %v641_v31 = vadd.f32 0.5, %v628_v17 }
  0x2c   : > { %3574 = vmatmul.mubr.bf16.vlgmr.msra.gmra.mxu0 %v3997_v9  ;;  %3637 = vmatprep.subr.bf16.mxu1 %v4115_v1 }
  0x2d   : > { %3577 = vmatprep.mubr.msk.bf16.mxu0 %vm5585_vm0, %v4115_v1  ;;  %3674 = vmatpush3.bf16.msra.mxu0 %v4004_v16  ;;  %v4385_v37 = vfloor.f32 %v652_v21  ;;  %v654_v44 = vmul.f32 0.1, %v641_v31  ;;  %v643_v21 = vadd.f32 0.5, %v630_v3 }
  0x2e   : > { %3675 = vmatprep.subr.bf16.mxu0 %v4115_v1 }
  0x2f   : > { %v678_v55 = vmul.f32 10.0, %v4385_v37  ;;  %v4445_v50 = vfloor.f32 %v654_v44  ;;  %v4024_v44 = vld [vmem:[%s5576_s2 + $0x30] sm:$0xff]  }
  0x31   : > { %3676 = vmatpush3.bf16.msra.mxu0 %v4006_v18  ;;  %v4359_v18 = vadd.s32 72, %v4311_v33  ;;  %v680_v23 = vmul.f32 10.0, %v4445_v50 }
  0x32   : > { %3677 = vmatprep.subr.bf16.mxu0 %v4115_v1 }
  0x33   : > { %v629_v32 = vcvt.s32.f32 %v4359_v18 }
  0x34   : > { %3578 = vmatmul.mubr.bf16.gmra.mxu0 %v3998_v10  ;;  %v4350_v10 = vld [vmem:[%s5579_s5] ss:$0 sm:$0xff] }
  0x35   : > { %3581 = vmatprep.mubr.msk.bf16.mxu0 %vm5585_vm0, %v4115_v1  ;;  %3678 = vmatpush3.bf16.msra.mxu0 %v4008_v20  ;;  %v687_v20 = vsub.f32 %v622_v41, %v674_v7 }
  0x36   : > { %3679 = vmatprep.subr.bf16.mxu0 %v4115_v1 }
  0x37   : > { %vm739_vm4 = vcmp.ge.f32.partialorder %v687_v20, 1.0  ;;  %vm765_vm6 = vcmp.le.f32.partialorder %v687_v20, 8.0 }
  0x38   : > { %vm752_vm11 = vmand %vm4388_vm5, %vm739_vm4 }
  0x39   : > { %3680 = vmatpush3.bf16.msra.mxu0 %v4010_v22 }
  0x3a   : > { %3681 = vmatprep.subr.bf16.mxu0 %v4115_v1 }
  0x3c   : > { %3582 = vmatmul.mubr.bf16.gmra.mxu0 %v3999_v11  ;;  %v675_v11 = vmul.f32 10.0, %v662_v63  ;;  %v4432_v63 = vadd.s32 88, %v4311_v33 }
  0x3d   : > { %3585 = vmatprep.mubr.msk.bf16.mxu0 %vm5585_vm0, %v4115_v1  ;;  %3682 = vmatpush3.bf16.msra.mxu0 %v4012_v24 }
  0x3e   : > { %3683 = vmatprep.subr.bf16.mxu0 %v4115_v1  ;;  %v688_v24 = vsub.f32 %v623_v43, %v675_v11 }
  0x40   : > { %vm740_vm7 = vcmp.ge.f32.partialorder %v688_v24, 1.0  ;;  %vm766_vm9 = vcmp.le.f32.partialorder %v688_v24, 8.0 }
  0x41   : > { %3684 = vmatpush3.bf16.msra.mxu0 %v4014_v26  ;;  %vm4424_vm12 = vmand %vm4400_vm8, %vm740_vm7  ;;  %vm704_vm8 = vcmp.ge.f32.partialorder %v4385_v37, 1.0 }
  0x42   : > { %3685 = vmatprep.subr.bf16.mxu0 %v4115_v1 }
  0x44   : > { %3586 = vmatmul.mubr.bf16.gmra.mxu0 %v4000_v12  ;;  %v4352_v12 = vfloor.f32 %v650_v0 }
  0x45   : > { %3589 = vmatprep.mubr.msk.bf16.mxu0 %vm5585_vm0, %v4115_v1  ;;  %3686 = vmatpush3.bf16.msra.mxu0 %v4016_v28 }
  0x46   : > { %3687 = vmatprep.subr.bf16.mxu0 %v4115_v1  ;;  %v676_v25 = vmul.f32 10.0, %v4352_v12  ;;  %vm702_vm10 = vcmp.ge.f32.partialorder %v4352_v12, 1.0  ;;  %vm715_vm13 = vcmp.le.f32.partialorder %v4352_v12, 8.0 }
  0x47   : > { %vm4464_vm5 = vmand %vm702_vm10, %vm715_vm13  ;;  %vm717_vm10 = vcmp.le.f32.partialorder %v4385_v37, 8.0 }
  0x48   : > { %v4394_v40 = vsub.f32 %v624_v49, %v676_v25  ;;  %v642_v49 = vadd.f32 0.5, %v629_v32  ;;  %v4490_v25 = vadd.s32 96, %v4311_v33 }
  0x49   : > { %3688 = vmatpush3.bf16.msra.mxu0 %v4018_v30 }
  0x4a   : > { %3745 = vmatprep.subr.bf16.mxu0 %v4115_v1  ;;  %vm741_vm14 = vcmp.ge.f32.partialorder %v4394_v40, 1.0  ;;  %vm767_vm4 = vcmp.le.f32.partialorder %v4394_v40, 8.0 }
  0x4c   : > { %3590 = vmatmul.mubr.bf16.gmra.mxu0 %v4001_v13  ;;  %v651_v13 = vmul.f32 0.1, %v638_v2 }
  0x4d   : > { %3593 = vmatprep.mubr.msk.bf16.mxu0 %vm5585_vm0, %v4115_v1 }
  0x4e   : > { %v4367_v26 = vfloor.f32 %v651_v13 }
  0x50   : > { %v677_v41 = vmul.f32 10.0, %v4367_v26  ;;  %vm703_vm1 = vcmp.ge.f32.partialorder %v4367_v26, 1.0  ;;  %vm716_vm2 = vcmp.le.f32.partialorder %v4367_v26, 8.0 }
  0x52   : > { %v690_v62 = vsub.f32 %v625_v57, %v677_v41  ;;  %v655_v57 = vmul.f32 0.1, %v642_v49 }
  0x54   : > { %3594 = vmatmul.mubr.bf16.gmra.mxu0 %v4002_v14  ;;  %vm768_vm7 = vcmp.le.f32.partialorder %v690_v62, 8.0  ;;  %v4487_v24 = vfloor.f32 %v655_v57 }
  0x55   : > { %3597 = vmatprep.mubr.msk.bf16.mxu0 %vm5585_vm0, %v4115_v1 }
  0x56   : > { %v681_v39 = vmul.f32 10.0, %v4487_v24 }
  0x58   : > { %v4564_v60 = vsub.f32 %v629_v32, %v681_v39 }
  0x5c   : > { %3598 = vmatmul.mubr.bf16.gmra.mxu0 %v4003_v15  ;;  %v640_v15 = vadd.f32 0.5, %v627_v4 }
  0x5d   : > { %3689 = vmatprep.mubr.msk.bf16.mxu0 %vm5585_vm0, %v4115_v1 }
  0x5e   : > { %v653_v28 = vmul.f32 0.1, %v640_v15 }
  0x60   : > { %v4404_v46 = vfloor.f32 %v653_v28 }
  0x62   : > { %v679_v2 = vmul.f32 10.0, %v4404_v46 }
  0x64   : > { %v4481_v12 = vsub.f32 %v627_v4, %v679_v2 }
  0xec   : > { %v512_v9 = vpop.f32.mrf.mxu0 }
  0xed   : > { %v573_v14 = vmul.f32 %v4340_v5, %v512_v9 }
  0xee   : > { %v3575_v16 = vpop.f32.mrf.mxu0 }
  0xef   : > { %v593_v19 = vadd.f32 %v4350_v10, %v573_v14  ;;  %v4458_v14 = vsub.f32 %v626_v61, %v678_v55 }
  0xf0   : > { %v515_v22 = vpop.f32.mrf.mxu0 }
  0xf1   : > { %v574_v27 = vmul.f32 %v4340_v5, %v515_v22  ;;  %v789_v34 = vmax.f32 %v593_v19, 0.0  ;;  %v631_v19 = vcvt.s32.f32 %v4432_v63 }
  0xf2   : > { %v3576_v30 = vpop.f32.mrf.mxu0 }
  0xf3   : > { %v594_v35 = vadd.f32 %v4350_v10, %v574_v27  ;;  %v828_v51 = vsel %vm4370_vm15, %v789_v34, 0.0  ;;  %vm4439_vm15 = vmand %vm752_vm11, %vm765_vm6  ;;  %vm742_vm6 = vcmp.ge.f32.partialorder %v690_v62, 1.0  ;;  %v644_v29 = vadd.f32 0.5, %v631_v19 }
  0xf4   : > { %v520_v38 = vpop.f32.mrf.mxu0  ;;  %vm754_vm11 = vmand %vm4464_vm5, %vm741_vm14  ;;  %vm718_vm14 = vcmp.le.f32.partialorder %v4404_v46, 8.0  ;;  %v656_v34 = vmul.f32 0.1, %v643_v21  ;;  %vm770_vm5 = vcmp.le.f32.partialorder %v4481_v12, 8.0 }
  0xf5   : > { %v790_v42 = vmax.f32 %v594_v35, 0.0  ;;  %v575_v43 = vmul.f32 %v4340_v5, %v520_v38  ;;  %v4525_v38 = vsub.f32 %v628_v17, %v680_v23  ;;  %v657_v49 = vmul.f32 0.1, %v644_v29 }
  0xf6   : > { %v3579_v48 = vpop.f32.mrf.mxu0  ;;  %v4559_v55 = vfloor.f32 %v656_v34  ;;  %v4023_v34 = vld [vmem:[%s5576_s2 + $0x38] sm:$0xff]  }
  0xf7   : > { %v829_v52 = vsel %vm4381_vm3, %v790_v42, 0.0  ;;  %v595_v54 = vadd.f32 %v4350_v10, %v575_v43  ;;  %vm4451_vm3 = vmand %vm4424_vm12, %vm766_vm9  ;;  %vm743_vm12 = vcmp.ge.f32.partialorder %v4458_v14, 1.0  ;;  %v632_v42 = vcvt.s32.f32 %v4490_v25  ;;  %v4038_v25 = vld [vmem:[%s5576_s2 + $0x8] sm:$0xff]  }
  0xf8   : > { %v3331_v56 = vpack.c.bf16 %v829_v52, %v828_v51  ;;  %v523_v58 = vpop.f32.mrf.mxu0  ;;  %vm4475_vm9 = vmand %vm703_vm1, %vm716_vm2  ;;  %vm705_vm1 = vcmp.ge.f32.partialorder %v4404_v46, 1.0  ;;  %vm744_vm2 = vcmp.ge.f32.partialorder %v4481_v12, 1.0  ;;  %v4587_v57 = vfloor.f32 %v657_v49 }
  0xf9   : > { %v576_v0 = vmul.f32 %v4340_v5, %v523_v58  ;;  %v791_v9 = vmax.f32 %v595_v54, 0.0  ;;  %vm4505_vm13 = vmand %vm4475_vm9, %vm742_vm6  ;;  %vm1297_vm6 = vcmask 1046528   ;;  %v645_v62 = vadd.f32 0.5, %v632_v42 }
  0xfa   : > { %3332 = vst [vmem:[#allocation2] sm:$0xff] %v3331_v56   ;;  %v3580_v8 = vpop.f32.mrf.mxu0  ;;  %vm4543_vm9 = vmand %vm704_vm8, %vm717_vm10  ;;  %vm745_vm8 = vcmp.ge.f32.partialorder %v4525_v38, 1.0  ;;  %v682_v13 = vmul.f32 10.0, %v4559_v55 }
  0xfb   : > { %v596_v11 = vadd.f32 %v4350_v10, %v576_v0  ;;  %v830_v26 = vsel %vm4439_vm15, %v791_v9, 0.0  ;;  %vm769_vm15 = vcmp.le.f32.partialorder %v4458_v14, 8.0  ;;  %vm4554_vm0 = vmand %vm705_vm1, %vm718_vm14  ;;  %vm707_vm1 = vcmp.ge.f32.partialorder %v4487_v24, 1.0 }
  0xfc   : > { %v528_v15 = vpop.f32.mrf.mxu0  ;;  %vm756_vm10 = vmand %vm4543_vm9, %vm743_vm12  ;;  %v658_v61 = vmul.f32 0.1, %v645_v62  ;;  %vm772_vm9 = vcmp.le.f32.partialorder %v4564_v60, 8.0 }
  0xfd   : > { %v792_v20 = vmax.f32 %v596_v11, 0.0  ;;  %v577_v53 = vmul.f32 %v4340_v5, %v528_v15  ;;  %vm4582_vm14 = vmand %vm4554_vm0, %vm744_vm2  ;;  %vm771_vm2 = vcmp.le.f32.partialorder %v4525_v38, 8.0 }
  0xfe   : > { %v3583_v22 = vpop.f32.mrf.mxu0  ;;  %vm4595_vm12 = vmand %vm756_vm10, %vm769_vm15  ;;  %vm5629_vm10 = vmmov 0  }
  0xff   : > { %v831_v59 = vsel %vm4451_vm3, %v792_v20, 0.0  ;;  %v597_v4 = vadd.f32 %v4350_v10, %v577_v53  ;;  %vm4518_vm3 = vmand %vm754_vm11, %vm767_vm4  ;;  %vm706_vm11 = vcmp.ge.f32.partialorder %v4445_v50, 1.0 }
 0x100   : > { %v3336_v27 = vpack.c.bf16 %v831_v59, %v830_v26  ;;  %v531_v28 = vpop.f32.mrf.mxu0  ;;  %vm4533_vm4 = vmand %vm4505_vm13, %vm768_vm7  ;;  %vm719_vm7 = vcmp.le.f32.partialorder %v4445_v50, 8.0  ;;  %vm979_vm13 = vsmask.f32 7424  ;;  %v4026_v59 = vld [vmem:[%s5576_s2 + $0x138] sm:$0xff]  }
 0x101   : > { %v578_v30 = vmul.f32 %v4340_v5, %v531_v28  ;;  %v908_v31 = vld [vmem:[#allocation2 + $0x4] sm:$0xf]  ;;  %v907_v41 = vld [vmem:[#allocation2] sm:$0xf]  ;;  %v793_v43 = vmax.f32 %v597_v4, 0.0  ;;  %vm4605_vm0 = vmand %vm4582_vm14, %vm770_vm5  ;;  %vm746_vm5 = vcmp.ge.f32.partialorder %v4564_v60, 1.0 }
 0x102   : > { %3399 = vst [vmem:[#allocation2 + $0x8] sm:$0xff] %v3336_v27   ;;  %v3584_v36 = vpop.f32.mrf.mxu0  ;;  %v1276_v48 = vld [vmem:[#allocation2] sm:$0xe]  ;;  %v4537_v6 = vcombine.low %v907_v41, %v908_v31  ;;  %vm4618_vm15 = vmand %vm706_vm11, %vm719_vm7  ;;  %v683_v28 = vmul.f32 10.0, %v4587_v57  ;;  %vm708_vm11 = vcmp.ge.f32.partialorder %v4559_v55, 1.0  ;;  %vm709_vm14 = vcmp.ge.f32.partialorder %v4587_v57, 1.0 }
 0x103   : > { %v598_v45 = vadd.f32 %v4350_v10, %v578_v30  ;;  %v3112_v58 = vcombine.low %v1276_v48, %v908_v31  ;;  %v832_v46 = vsel %vm4518_vm3, %v793_v43, 0.0  ;;  %vm720_vm3 = vcmp.le.f32.partialorder %v4487_v24, 8.0  ;;  %vm4657_vm7 = vmand %vm4618_vm15, %vm745_vm8  ;;  %v1859_v12 = vld [vmem:[#allocation2 + $0x4] sm:$0xc] }
 0x104   : > { %v536_v17 = vpop.f32.mrf.mxu0  ;;  %v983_v37 = vshll.u32 %v4537_v6, 16  ;;  %v981_v53 = vshrl.u32 %v4537_v6, 16  ;;  %v4643_v36 = vsub.f32 %v630_v3, %v682_v13  ;;  %v4646_v24 = vfloor.f32 %v658_v61  ;;  %v4027_v13 = vld [vmem:[%s5576_s2 + $0x28] sm:$0xff]   ;;  %v4032_v61 = vld [vmem:[%s5576_s2 + $0x120] sm:$0xff]  }
 0x105   : > { %v794_v51 = vmax.f32 %v598_v45, 0.0  ;;  %v579_v52 = vmul.f32 %v4340_v5, %v536_v17  ;;  %v1298_v20 = vrot.slane %v3112_v58, 1  ;;  %v4028_v45 = vld [vmem:[%s5576_s2 + $0x130] sm:$0xff]   ;;  %v4681_v49 = vsub.f32 %v631_v19, %v683_v28  ;;  %v4033_v17 = vld [vmem:[%s5576_s2 + $0x18] sm:$0xff]   ;;  %v1445_v60 = vld [vmem:[#allocation2 + $0x4] sm:$0xe] }
 0x106   : > { %v3587_v56 = vpop.f32.mrf.mxu0  ;;  %v985_v8 = vrot.slane %v983_v37, 1  ;;  %v684_v37 = vmul.f32 10.0, %v4646_v24 }
 0x107   : > { %v833_v0 = vsel %vm4533_vm4, %v794_v51, 0.0  ;;  %v599_v2 = vadd.f32 %v4350_v10, %v579_v52  ;;  %vm4633_vm4 = vmand %vm707_vm1, %vm720_vm3  ;;  %vm721_vm1 = vcmp.le.f32.partialorder %v4559_v55, 8.0  ;;  %vm722_vm3 = vcmp.le.f32.partialorder %v4587_v57, 8.0 }
 0x108   : > { %v3341_v18 = vpack.c.bf16 %v833_v0, %v832_v46  ;;  %v539_v32 = vpop.f32.mrf.mxu0  ;;  %v986_v27 = vor.u32 %v985_v8, %v981_v53  ;;  %vm4671_vm8 = vmand %vm4633_vm4, %vm746_vm5  ;;  %v4031_v0 = vld [vmem:[%s5576_s2 + $0x128] sm:$0xff]   ;;  %vm748_vm5 = vcmp.ge.f32.partialorder %v4681_v49, 1.0 }
 0x109   : > { %v580_v9 = vmul.f32 %v4340_v5, %v539_v32  ;;  %v4590_v11 = vld [vmem:[#allocation2 + $0x8] sm:$0xff]   ;;  %v795_v21 = vmax.f32 %v599_v2, 0.0  ;;  %vm4720_vm15 = vmand %vm708_vm11, %vm721_vm1  ;;  %vm723_vm11 = vcmp.le.f32.partialorder %v4646_v24, 8.0 }
 0x10a   : > { %3400 = vst [vmem:[#allocation2 + $0x10] sm:$0xff] %v3341_v18   ;;  %v3588_v16 = vpop.f32.mrf.mxu0  ;;  %v1299_v14 = vrot.slane %v4590_v11, 1  ;;  %v988_v26 = vshll.u32 %v4590_v11, 16  ;;  %v992_v54 = vshrl.u32 %v4590_v11, 16  ;;  %vm4737_vm4 = vmand %vm709_vm14, %vm722_vm3  ;;  %vm774_vm14 = vcmp.le.f32.partialorder %v4681_v49, 8.0 }
 0x10b   : > { %v600_v22 = vadd.f32 %v4350_v10, %v580_v9  ;;  %v834_v39 = vsel %vm4595_vm12, %v795_v21, 0.0  ;;  %vm4695_vm12 = vmand %vm4657_vm7, %vm771_vm2  ;;  %vm747_vm2 = vcmp.ge.f32.partialorder %v4643_v36, 1.0  ;;  %v4747_v16 = vsub.f32 %v632_v42, %v684_v37  ;;  %v2028_v23 = vld [vmem:[#allocation2 + $0x8] sm:$0xc] }
 0x10c   : > { %v544_v4 = vpop.f32.mrf.mxu0  ;;  %v1300_v30 = vsel %vm1297_vm6, %v1298_v20, %v1299_v14  ;;  %v990_v31 = vrot.slane %v988_v26, 1  ;;  %vm4760_vm7 = vmand %vm4720_vm15, %vm747_vm2  ;;  %v4783_v26 = vld [vmem:[#allocation2 + $0x8] sm:$0xf] }
 0x10d   : > { %v796_v33 = vmax.f32 %v600_v22, 0.0  ;;  %v581_v29 = vmul.f32 %v4340_v5, %v544_v4  ;;  %3690 = vmatmul.mubr.bf16.vlgmr.msra.gmra.mxu0 %v1300_v30  ;;  %vm4775_vm1 = vmand %vm4737_vm4, %vm748_vm5  ;;  %vm775_vm2 = vcmp.le.f32.partialorder %v4747_v16, 8.0  ;;  %vm1880_vm4 = vcmask 1045504  }
 0x10e   : > { %v3591_v35 = vpop.f32.mrf.mxu0  ;;  %v991_v3 = vsel %vm979_vm13, %v986_v27, %v990_v31  ;;  %3693 = vmatprep.mubr.msk.bf16.mxu0 %vm5629_vm10, %v4115_v1  ;;  %3746 = vmatpush3.bf16.msra.mxu0 %v4026_v59  ;;  %v994_v18 = vor.u32 %v992_v54, %v990_v31  ;;  %vm4820_vm15 = vmand %vm4775_vm1, %vm774_vm14 }
 0x10f   : > { %v835_v41 = vsel %vm4605_vm0, %v796_v33, 0.0  ;;  %v601_v43 = vadd.f32 %v4350_v10, %v581_v29  ;;  %3618 = vmatmul.mubr.bf16.vlgmr.msra.gmra.mxu1 %v991_v3  ;;  %3747 = vmatprep.subr.bf16.mxu0 %v4115_v1  ;;  %vm4707_vm0 = vmand %vm4671_vm8, %vm772_vm9  ;;  %vm710_vm9 = vcmp.ge.f32.partialorder %v4646_v24, 1.0  ;;  %vm773_vm8 = vcmp.le.f32.partialorder %v4643_v36, 8.0  ;;  %v4035_v35 = vld [vmem:[%s5576_s2 + $0x118] sm:$0xff]  }
 0x110   : > { %v3346_v40 = vpack.c.bf16 %v835_v41, %v834_v39  ;;  %v547_v48 = vpop.f32.mrf.mxu0  ;;  %3638 = vmatpush3.bf16.msra.mxu1 %v4023_v34  ;;  %3621 = vmatprep.mubr.msk.bf16.mxu1 %vm5629_vm10, %v4115_v1  ;;  %vm4795_vm3 = vmand %vm710_vm9, %vm723_vm11  ;;  %vm2252_vm11 = vsmask.f32 5376 }
 0x111   : > { %v582_v51 = vmul.f32 %v4340_v5, %v547_v48  ;;  %v4686_v52 = vld [vmem:[#allocation2 + $0x10] sm:$0xff]   ;;  %3639 = vmatprep.subr.bf16.mxu1 %v4115_v1  ;;  %v797_v56 = vmax.f32 %v601_v43, 0.0  ;;  %v3192_v43 = vcombine.low %v1859_v12, %v4783_v26 }
 0x112   : > { %3401 = vst [vmem:[#allocation2 + $0x18] sm:$0xff] %v3346_v40   ;;  %v3592_v19 = vpop.f32.mrf.mxu0  ;;  %v1301_v62 = vrot.slane %v4686_v52, 1  ;;  %v996_v46 = vshll.u32 %v4686_v52, 16  ;;  %3748 = vmatpush3.bf16.msra.mxu0 %v4028_v45  ;;  %v1000_v33 = vshrl.u32 %v4686_v52, 16  ;;  %v4826_v41 = vld [vmem:[#allocation2 + $0xc] sm:$0xff]  }
 0x113   : > { %v602_v58 = vadd.f32 %v4350_v10, %v582_v51  ;;  %3749 = vmatprep.subr.bf16.mxu0 %v4115_v1  ;;  %v836_v57 = vsel %vm4695_vm12, %v797_v56, 0.0  ;;  %vm749_vm12 = vcmp.ge.f32.partialorder %v4747_v16, 1.0  ;;  %v4037_v19 = vld [vmem:[%s5576_s2 + $0x110] sm:$0xff]   ;;  %v1882_v38 = vrot.slane %v4826_v41, 2 }
 0x114   : > { %v552_v2 = vpop.f32.mrf.mxu0  ;;  %3640 = vmatpush3.bf16.msra.mxu1 %v4024_v44  ;;  %v1302_v55 = vsel %vm1297_vm6, %v1299_v14, %v1301_v62  ;;  %v998_v9 = vrot.slane %v996_v46, 1  ;;  %v4030_v14 = vld [vmem:[%s5576_s2 + $0x20] sm:$0xff]   ;;  %vm4834_vm5 = vmand %vm4795_vm3, %vm749_vm12  ;;  %v1682_v12 = vshll.u32 %v4826_v41, 16 }
 0x115   : > { %v798_v32 = vmax.f32 %v602_v58, 0.0  ;;  %v583_v7 = vmul.f32 %v4340_v5, %v552_v2  ;;  %3694 = vmatmul.mubr.bf16.gmra.mxu0 %v1302_v55  ;;  %3641 = vmatprep.subr.bf16.mxu1 %v4115_v1  ;;  %vm4860_vm9 = vmand %vm4834_vm5, %vm775_vm2  ;;  %v1881_v58 = vrot.slane %v3192_v43, 2  ;;  %v4040_v2 = vld [vmem:[%s5576_s2 + $0x108] sm:$0xff]  }
 0x116   : > { %v3595_v15 = vpop.f32.mrf.mxu0  ;;  %v999_v42 = vsel %vm979_vm13, %v994_v18, %v998_v9  ;;  %3697 = vmatprep.mubr.msk.bf16.mxu0 %vm5629_vm10, %v4115_v1  ;;  %3750 = vmatpush3.bf16.msra.mxu0 %v4031_v0  ;;  %v1002_v39 = vor.u32 %v1000_v33, %v998_v9 }
 0x117   : > { %v837_v20 = vsel %vm4707_vm0, %v798_v32, 0.0  ;;  %v603_v53 = vadd.f32 %v4350_v10, %v583_v7  ;;  %3622 = vmatmul.mubr.bf16.gmra.mxu1 %v999_v42  ;;  %3751 = vmatprep.subr.bf16.mxu0 %v4115_v1  ;;  %vm4806_vm0 = vmand %vm4760_vm7, %vm773_vm8  ;;  %v4880_v18 = vsel %vm1880_vm4, %v1881_v58, %v1882_v38  ;;  %v4889_v15 = vcombine.low %v1445_v60, %v4783_v26  ;;  %v4048_v60 = vld [vmem:[%s5576_s2 + $0x1b8] sm:$0xff]  }
 0x118   : > { %v3351_v21 = vpack.c.bf16 %v837_v20, %v836_v57  ;;  %v555_v22 = vpop.f32.mrf.mxu0  ;;  %3642 = vmatpush3.bf16.msra.mxu1 %v4027_v13  ;;  %3625 = vmatprep.mubr.msk.bf16.mxu1 %vm5629_vm10, %v4115_v1  ;;  %vm2463_vm7 = vcmask 1044480  }
 0x119   : > { %v584_v59 = vmul.f32 %v4340_v5, %v555_v22  ;;  %v4787_v4 = vld [vmem:[#allocation2 + $0x18] sm:$0xff]   ;;  %3643 = vmatprep.subr.bf16.mxu1 %v4115_v1  ;;  %v799_v30 = vmax.f32 %v603_v53, 0.0  ;;  %v4042_v22 = vld [vmem:[%s5576_s2 + $0x100] sm:$0xff]   ;;  %v1671_v26 = vshrl.u32 %v4889_v15, 16 }
 0x11a   : > { %3402 = vst [vmem:[#allocation2 + $0x20] sm:$0xff] %v3351_v21   ;;  %v3596_v27 = vpop.f32.mrf.mxu0  ;;  %v1303_v31 = vrot.slane %v4787_v4, 1  ;;  %v1004_v34 = vshll.u32 %v4787_v4, 16  ;;  %3752 = vmatpush3.bf16.msra.mxu0 %v4032_v61  ;;  %v4868_v56 = vld [vmem:[#allocation2 + $0x14] sm:$0xff]   ;;  %v1008_v8 = vshrl.u32 %v4787_v4, 16  ;;  %v4041_v21 = vld [vmem:[%s5576_s2] sm:$0xff]  }
 0x11b   : > { %v604_v50 = vadd.f32 %v4350_v10, %v584_v59  ;;  %3753 = vmatprep.subr.bf16.mxu0 %v4115_v1  ;;  %v838_v44 = vsel %vm4806_vm0, %v799_v30, 0.0  ;;  %v1884_v42 = vrot.slane %v4868_v56, 2  ;;  %v1679_v59 = vshrl.u32 %v4826_v41, 16  ;;  %v4915_v27 = vld [vmem:[#allocation2 + $0xc] sm:$0xf] }
 0x11c   : > { %v560_v24 = vpop.f32.mrf.mxu0  ;;  %v1304_v40 = vsel %vm1297_vm6, %v1301_v62, %v1303_v31  ;;  %3644 = vmatpush3.bf16.msra.mxu1 %v4030_v14  ;;  %v1006_v48 = vrot.slane %v1004_v34, 1 }
 0x11d   : > { %v800_v47 = vmax.f32 %v604_v50, 0.0  ;;  %v585_v3 = vmul.f32 %v4340_v5, %v560_v24  ;;  %3698 = vmatmul.mubr.bf16.gmra.mxu0 %v1304_v40  ;;  %3645 = vmatprep.subr.bf16.mxu1 %v4115_v1  ;;  %v4909_v14 = vsel %vm1880_vm4, %v1882_v38, %v1884_v42  ;;  %v1681_v36 = vrot.slane %v1679_v59, 1  ;;  %v4050_v59 = vld [vmem:[%s5576_s2 + $0x1b0] sm:$0xff]  }
 0x11e   : > { %v3599_v5 = vpop.f32.mrf.mxu0  ;;  %v1007_v63 = vsel %vm979_vm13, %v1002_v39, %v1006_v48  ;;  %3701 = vmatprep.mubr.msk.bf16.mxu0 %vm5629_vm10, %v4115_v1  ;;  %3754 = vmatpush3.bf16.msra.mxu0 %v4035_v35  ;;  %v1010_v20 = vor.u32 %v1008_v8, %v1006_v48  ;;  %v1674_v35 = vshll.u32 %v4889_v15, 16  ;;  %v1684_v24 = vrot.slane %v1682_v12, 2 }
 0x11f   : > { %v839_v49 = vsel %vm4820_vm15, %v800_v47, 0.0  ;;  %v605_v51 = vadd.f32 %v4350_v10, %v585_v3  ;;  %3626 = vmatmul.mubr.bf16.gmra.mxu1 %v1007_v63  ;;  %v4036_v10 = vld [vmem:[%s5576_s2 + $0x10] sm:$0xff]   ;;  %3755 = vmatprep.subr.bf16.mxu0 %v4115_v1  ;;  %v4930_v39 = vcombine.low %v2028_v23, %v4915_v27  ;;  %v1688_v48 = vshrl.u32 %v4868_v56, 16 }
 0x120   : > { %v3356_v54 = vpack.c.bf16 %v839_v49, %v838_v44  ;;  %v563_v62 = vpop.f32.mrf.mxu0  ;;  %3646 = vmatpush3.bf16.msra.mxu1 %v4033_v17  ;;  %3629 = vmatprep.mubr.msk.bf16.mxu1 %vm5629_vm10, %v4115_v1  ;;  %v1691_v17 = vshll.u32 %v4868_v56, 16  ;;  %v1673_v44 = vrot.slane %v1671_v26, 1  ;;  %v1676_v49 = vrot.slane %v1674_v35, 2 }
 0x121   : > { %v801_v46 = vmax.f32 %v605_v51, 0.0  ;;  %v4871_v0 = vld [vmem:[#allocation2 + $0x20] sm:$0xff]   ;;  %3647 = vmatprep.subr.bf16.mxu1 %v4115_v1  ;;  %v4942_v51 = vld [vmem:[#allocation2 + $0x10] sm:$0xff]   ;;  %v1685_v37 = vor.u32 %v1684_v24, %v1681_v36  ;;  %v1690_v38 = vrot.slane %v1688_v48, 1 }
 0x122   : > { %3403 = vst [vmem:[#allocation2 + $0x28] sm:$0xff] %v3356_v54   ;;  %v3600_v32 = vpop.f32.mrf.mxu0  ;;  %v1305_v55 = vrot.slane %v4871_v0, 1  ;;  %v1012_v9 = vshll.u32 %v4871_v0, 16  ;;  %3756 = vmatpush3.bf16.msra.mxu0 %v4037_v19  ;;  %v4891_v16 = vld [vmem:[#allocation2 + $0x1c] sm:$0xff]   ;;  %v2254_v54 = vshrl.u32 %v4930_v39, 16  ;;  %v1693_v62 = vrot.slane %v1691_v17, 2 }
 0x123   : > { %v840_v7 = vsel %vm4860_vm9, %v801_v46, 0.0  ;;  %3757 = vmatprep.subr.bf16.mxu0 %v4115_v1  ;;  %v1886_v28 = vrot.slane %v4891_v16, 2  ;;  %v4947_v19 = vld [vmem:[#allocation2 + $0x18] sm:$0xff]   ;;  %v2257_v46 = vshll.u32 %v4930_v39, 16  ;;  %v4046_v24 = vld [vmem:[%s5576_s2 + $0xf0] sm:$0xff]   ;;  %v4053_v17 = vld [vmem:[%s5576_s2 + $0x1a8] sm:$0xff]  }
 0x124   : > { %v3317_v13 = vpack.c.bf16 %v840_v7, %v840_v7  ;;  %v1306_v57 = vsel %vm1297_vm6, %v1303_v31, %v1305_v55  ;;  %v1014_v53 = vrot.slane %v1012_v9, 1  ;;  %3648 = vmatpush3.bf16.msra.mxu1 %v4036_v10  ;;  %v1016_v31 = vshrl.u32 %v4871_v0, 16  ;;  %v4952_v10 = vld [vmem:[#allocation2 + $0x20] sm:$0xff]  }
 0x125   : > { %3702 = vmatmul.mubr.bf16.gmra.mxu0 %v1306_v57  ;;  %3649 = vmatprep.subr.bf16.mxu1 %v4115_v1  ;;  %v4924_v30 = vsel %vm1880_vm4, %v1884_v42, %v1886_v28  ;;  %v2256_v8 = vrot.slane %v2254_v54, 2  ;;  %v2259_v9 = vrot.slane %v2257_v46, 3  ;;  %v2271_v57 = vshrl.u32 %v4947_v19, 16 }
 0x126   : > { %906 = vst [vmem:[#allocation2 + $0x30] sm:$0x7] %v3317_v13  ;;  %v1015_v61 = vsel %vm979_vm13, %v1010_v20, %v1014_v53  ;;  %3705 = vmatprep.mubr.msk.bf16.mxu0 %vm5629_vm10, %v4115_v1  ;;  %3758 = vmatpush3.bf16.msra.mxu0 %v4040_v2  ;;  %v1018_v3 = vor.u32 %v1016_v31, %v1014_v53  ;;  %v2265_v13 = vshll.u32 %v4942_v51, 16  ;;  %v4045_v53 = vld [vmem:[%s5576_s2 + $0xf8] sm:$0xff]   ;;  %v2274_v42 = vshll.u32 %v4947_v19, 16 }
 0x127   : > { %3630 = vmatmul.mubr.bf16.gmra.mxu1 %v1015_v61  ;;  %3759 = vmatprep.subr.bf16.mxu0 %v4115_v1  ;;  %v1677_v2 = vor.u32 %v1676_v49, %v1673_v44  ;;  %v2280_v61 = vshrl.u32 %v4952_v10, 16  ;;  %v2273_v23 = vrot.slane %v2271_v57, 2  ;;  %v2283_v26 = vshll.u32 %v4952_v10, 16 }
 0x128   : > { %3650 = vmatpush3.bf16.msra.mxu1 %v4038_v25  ;;  %3633 = vmatprep.mubr.msk.bf16.mxu1 %vm5629_vm10, %v4115_v1  ;;  %v2276_v12 = vrot.slane %v2274_v42, 3  ;;  %v1697_v31 = vshrl.u32 %v4891_v16, 16  ;;  %v4058_v42 = vld [vmem:[%s5576_s2 + $0xd0] sm:$0xff]  }
 0x129   : > { %v4039_v33 = vld [vmem:[#allocation2 + $0x28] ss:$0 sps:$4 sm:$0x11]   ;;  %3651 = vmatprep.subr.bf16.mxu1 %v4115_v1  ;;  %v4934_v40 = vld [vmem:[#allocation2 + $0x2c] ss:$0 sps:$4 sm:$0x33]  }
 0x12a   : > { %v4920_v29 = vld [vmem:[#allocation2 + $0x24] sm:$0xff]   ;;  %v1307_v50 = vrot.slane %v4039_v33, 1  ;;  %v1020_v34 = vshll.u32 %v4039_v33, 16  ;;  %3760 = vmatpush3.bf16.msra.mxu0 %v4042_v22  ;;  %v1890_v58 = vrot.slane %v4934_v40, 2  ;;  %v2267_v22 = vrot.slane %v2265_v13, 3  ;;  %v4055_v13 = vld [vmem:[%s5576_s2 + $0xd8] sm:$0xff]  }
 0x12b   : > { %3817 = vmatprep.subr.bf16.mxu0 %v4115_v1  ;;  %v1888_v43 = vrot.slane %v4920_v29, 2  ;;  %v4959_v32 = vld [vmem:[#allocation2 + $0x28] sm:$0xff]   ;;  %v2285_v36 = vrot.slane %v2283_v26, 3 }
 0x12c   : > { %v1308_v47 = vsel %vm1297_vm6, %v1305_v55, %v1307_v50  ;;  %v1022_v45 = vrot.slane %v1020_v34, 1  ;;  %3652 = vmatpush3.bf16.msra.mxu1 %v4041_v21  ;;  %v2262_v55 = vshrl.u32 %v4942_v51, 16  ;;  %v1694_v21 = vor.u32 %v1693_v62, %v1690_v38 }
 0x12d   : > { %3706 = vmatmul.mubr.bf16.gmra.mxu0 %v1308_v47  ;;  %3709 = vmatprep.subr.bf16.mxu1 %v4115_v1  ;;  %v4945_v63 = vsel %vm1880_vm4, %v1886_v28, %v1888_v43  ;;  %v4962_v7 = vsel %vm1880_vm4, %v1888_v43, %v1890_v58  ;;  %v2282_v28 = vrot.slane %v2280_v61, 2  ;;  %v2289_v33 = vshrl.u32 %v4959_v32, 16  ;;  %v4049_v58 = vld [vmem:[%s5576_s2 + $0xe8] sm:$0xff]  }
 0x12e   : > { %v1023_v5 = vsel %vm979_vm13, %v1018_v3, %v1022_v45  ;;  %3761 = vmatprep.mubr.msk.bf16.mxu0 %vm5629_vm10, %v4115_v1  ;;  %vm1669_vm13 = vsmask.f32 6400  ;;  %v2264_v25 = vrot.slane %v2262_v55, 2  ;;  %v2292_v50 = vshll.u32 %v4959_v32, 16 }
 0x12f   : > { %3634 = vmatmul.mubr.bf16.gmra.mxu1 %v1023_v5  ;;  %v1686_v20 = vsel %vm1669_vm13, %v1677_v2, %v1685_v37  ;;  %v2260_v34 = vor.u32 %v2259_v9, %v2256_v8  ;;  %v1700_v43 = vshll.u32 %v4891_v16, 16  ;;  %v2277_v47 = vor.u32 %v2276_v12, %v2273_v23  ;;  %v4060_v23 = vld [vmem:[%s5576_s2 + $0xc8] sm:$0xff]  }
 0x130   : > { %3653 = vmatprep.mubr.msk.bf16.mxu1 %vm5629_vm10, %v4115_v1  ;;  %v2268_v35 = vor.u32 %v2267_v22, %v2264_v25  ;;  %v2291_v3 = vrot.slane %v2289_v33, 2  ;;  %v2286_v48 = vor.u32 %v2285_v36, %v2282_v28  ;;  %v1695_v54 = vsel %vm1669_vm13, %v1685_v37, %v1694_v21  ;;  %v4054_v37 = vld [vmem:[%s5576_s2 + $0x1a0] sm:$0xff]  }
 0x131   : > { %v1699_v38 = vrot.slane %v1697_v31, 1  ;;  %v1702_v62 = vrot.slane %v1700_v43, 2  ;;  %v1706_v55 = vshrl.u32 %v4920_v29, 16  ;;  %v1709_v8 = vshll.u32 %v4920_v29, 16  ;;  %v4063_v28 = vld [vmem:[%s5576_s2 + $0xc0] sm:$0xff]  }
 0x132   : > { %v4992_v45 = vsel %vm2252_vm11, %v2260_v34, %v2268_v35  ;;  %v4998_v5 = vsel %vm2252_vm11, %v2268_v35, %v2277_v47  ;;  %v5004_v49 = vsel %vm2252_vm11, %v2277_v47, %v2286_v48  ;;  %v1715_v61 = vshrl.u32 %v4934_v40, 16  ;;  %v4070_v34 = vld [vmem:[%s5576_s2 + $0x238] sm:$0xff]   ;;  %v4075_v47 = vld [vmem:[%s5576_s2 + $0x228] sm:$0xff]  }
 0x133   : > { %v1703_v2 = vor.u32 %v1702_v62, %v1699_v38  ;;  %v1708_v57 = vrot.slane %v1706_v55, 1  ;;  %v1502_v31 = vrot.slane %v4826_v41, 1  ;;  %v1501_v36 = vrot.slane %v4889_v15, 1  ;;  %v4072_v41 = vld [vmem:[%s5576_s2 + $0x230] sm:$0xff]   ;;  %v4079_v38 = vld [vmem:[%s5576_s2 + $0x218] sm:$0xff]  }
 0x134   : > { %v1717_v26 = vrot.slane %v1715_v61, 1  ;;  %v4068_v15 = vld [vmem:[%s5576_s2 + $0x170] sm:$0xff]   ;;  %v1504_v43 = vrot.slane %v4868_v56, 1  ;;  %v4076_v56 = vld [vmem:[%s5576_s2 + $0x220] sm:$0xff]  }
 0x135   : > { %3762 = vmatmul.mubr.bf16.vlgmr.msra.gmra.mxu0 %v1686_v20  ;;  %v1704_v9 = vsel %vm1669_vm13, %v1694_v21, %v1703_v2  ;;  %v1711_v20 = vrot.slane %v1709_v8, 2  ;;  %v1718_v21 = vshll.u32 %v4934_v40, 16  ;;  %v4064_v40 = vld [vmem:[%s5576_s2 + $0x180] sm:$0xff]   ;;  %v4080_v55 = vld [vmem:[%s5576_s2 + $0x150] sm:$0xff]   ;;  %v1508_v8 = vrot.slane %v4920_v29, 1 }
 0x136   : > { %3765 = vmatprep.mubr.msk.bf16.mxu0 %vm5629_vm10, %v4115_v1  ;;  %3818 = vmatpush3.bf16.msra.mxu0 %v4048_v60  ;;  %v4052_v60 = vld [vmem:[%s5576_s2 + $0xe0] sm:$0xff]  }
 0x137   : > { %3654 = vmatmul.mubr.bf16.vlgmr.msra.gmra.mxu1 %v4537_v6  ;;  %3819 = vmatprep.subr.bf16.mxu0 %v4115_v1  ;;  %v2294_v6 = vrot.slane %v2292_v50, 3  ;;  %v1712_v25 = vor.u32 %v1711_v20, %v1708_v57  ;;  %v2084_v50 = vrot.slane %v4930_v39, 2  ;;  %v2087_v39 = vrot.slane %v4947_v19, 2  ;;  %v4083_v57 = vld [vmem:[#allocation2 + $0x30] ss:$0 sps:$4 sm:$0x33]  }
 0x138   : > { %3710 = vmatpush3.bf16.msra.mxu1 %v4045_v53  ;;  %3657 = vmatprep.mubr.msk.bf16.mxu1 %vm5629_vm10, %v4115_v1  ;;  %v4059_v53 = vld [vmem:[%s5576_s2 + $0x190] sm:$0xff]   ;;  %v4085_v20 = vld [vmem:[#allocation2 + $0x2c] ss:$0 sps:$4 sm:$0x11]  }
 0x139   : > { %3711 = vmatprep.subr.bf16.mxu1 %v4115_v1  ;;  %v5000_v44 = vor.u32 %v2294_v6, %v2291_v3  ;;  %v1713_v22 = vsel %vm1669_vm13, %v1703_v2, %v1712_v25  ;;  %v4071_v6 = vld [vmem:[%s5576_s2 + $0x168] sm:$0xff]   ;;  %v1510_v61 = vrot.slane %v4085_v20, 1 }
 0x13a   : > { %3820 = vmatpush3.bf16.msra.mxu0 %v4050_v59  ;;  %v1720_v59 = vrot.slane %v1718_v21, 2  ;;  %v2442_v21 = vld [vmem:[#allocation2 + $0x8] sm:$0x8] }
 0x13b   : > { %3821 = vmatprep.subr.bf16.mxu0 %v4115_v1  ;;  %v5012_v46 = vsel %vm2252_vm11, %v2286_v48, %v5000_v44  ;;  %v1505_v48 = vsel %vm1297_vm6, %v1502_v31, %v1504_v43 }
 0x13c   : > { %3712 = vmatpush3.bf16.msra.mxu1 %v4046_v24  ;;  %v1721_v12 = vor.u32 %v1720_v59, %v1717_v26  ;;  %v1503_v24 = vsel %vm1297_vm6, %v1501_v36, %v1502_v31  ;;  %v2465_v26 = vrot.slane %v4942_v51, 3 }
 0x13d   : > { %3766 = vmatmul.mubr.bf16.gmra.mxu0 %v1695_v54  ;;  %3713 = vmatprep.subr.bf16.mxu1 %v4115_v1  ;;  %v4074_v54 = vld [vmem:[%s5576_s2 + $0x160] sm:$0xff]  }
 0x13e   : > { %3769 = vmatprep.mubr.msk.bf16.mxu0 %vm5629_vm10, %v4115_v1  ;;  %3822 = vmatpush3.bf16.msra.mxu0 %v4053_v17  ;;  %v1722_v33 = vsel %vm1669_vm13, %v1712_v25, %v1721_v12  ;;  %v2089_v17 = vrot.slane %v4952_v10, 2  ;;  %v2093_v25 = vrot.slane %v4083_v57, 2  ;;  %v4090_v12 = vld [vmem:[%s5576_s2 + $0x1f8] sm:$0xff]   ;;  %v4100_v57 = vld [vmem:[%s5577_s3 + $0x30] sm:$0xff]  }
 0x13f   : > { %3658 = vmatmul.mubr.bf16.gmra.mxu1 %v4590_v11  ;;  %3823 = vmatprep.subr.bf16.mxu0 %v4115_v1  ;;  %v4057_v11 = vld [vmem:[%s5576_s2 + $0x198] sm:$0xff]  }
 0x140   : > { %3714 = vmatpush3.bf16.msra.mxu1 %v4049_v58  ;;  %3661 = vmatprep.mubr.msk.bf16.mxu1 %vm5629_vm10, %v4115_v1  ;;  %v1506_v58 = vrot.slane %v4891_v16, 1  ;;  %v2090_v62 = vsel %vm1880_vm4, %v2087_v39, %v2089_v17  ;;  %v4081_v16 = vld [vmem:[%s5576_s2 + $0x210] sm:$0xff]  }
 0x141   : > { %3715 = vmatprep.subr.bf16.mxu1 %v4115_v1 }
 0x142   : > { %3824 = vmatpush3.bf16.msra.mxu0 %v4054_v37  ;;  %v4077_v37 = vld [vmem:[%s5576_s2 + $0x158] sm:$0xff]   ;;  %v1507_v2 = vsel %vm1297_vm6, %v1504_v43, %v1506_v58  ;;  %v1509_v29 = vsel %vm1297_vm6, %v1506_v58, %v1508_v8 }
 0x143   : > { %3825 = vmatprep.subr.bf16.mxu0 %v4115_v1 }
 0x144   : > { %3716 = vmatpush3.bf16.msra.mxu1 %v4052_v60  ;;  %v2091_v60 = vrot.slane %v4959_v32, 2 }
 0x145   : > { %3770 = vmatmul.mubr.bf16.gmra.mxu0 %v1704_v9  ;;  %3717 = vmatprep.subr.bf16.mxu1 %v4115_v1 }
 0x146   : > { %3773 = vmatprep.mubr.msk.bf16.mxu0 %vm5629_vm10, %v4115_v1  ;;  %3826 = vmatpush3.bf16.msra.mxu0 %v4057_v11  ;;  %v4084_v11 = vld [vmem:[%s5576_s2 + $0x208] sm:$0xff]   ;;  %v2092_v9 = vsel %vm1880_vm4, %v2089_v17, %v2091_v60 }
 0x147   : > { %3662 = vmatmul.mubr.bf16.gmra.mxu1 %v4686_v52  ;;  %3827 = vmatprep.subr.bf16.mxu0 %v4115_v1  ;;  %v4062_v52 = vld [vmem:[%s5576_s2 + $0x188] sm:$0xff]  }
 0x148   : > { %3718 = vmatpush3.bf16.msra.mxu1 %v4055_v13  ;;  %3665 = vmatprep.mubr.msk.bf16.mxu1 %vm5629_vm10, %v4115_v1  ;;  %v4082_v13 = vld [vmem:[%s5576_s2 + $0x148] sm:$0xff]  }
 0x149   : > { %3719 = vmatprep.subr.bf16.mxu1 %v4115_v1 }
 0x14a   : > { %3828 = vmatpush3.bf16.msra.mxu0 %v4059_v53  ;;  %v4087_v53 = vld [vmem:[%s5576_s2 + $0x200] sm:$0xff]  }
 0x14b   : > { %3829 = vmatprep.subr.bf16.mxu0 %v4115_v1 }
 0x14c   : > { %3720 = vmatpush3.bf16.msra.mxu1 %v4058_v42  ;;  %v4086_v42 = vld [vmem:[%s5576_s2 + $0x140] sm:$0xff]  }
 0x14d   : > { %3774 = vmatmul.mubr.bf16.gmra.mxu0 %v1713_v22  ;;  %3721 = vmatprep.subr.bf16.mxu1 %v4115_v1  ;;  %v1511_v22 = vsel %vm1297_vm6, %v1508_v8, %v1510_v61 }
 0x14e   : > { %3777 = vmatprep.mubr.msk.bf16.mxu0 %vm5629_vm10, %v4115_v1  ;;  %3830 = vmatpush3.bf16.msra.mxu0 %v4062_v52  ;;  %v2094_v52 = vsel %vm1880_vm4, %v2091_v60, %v2093_v25 }
 0x14f   : > { %3666 = vmatmul.mubr.bf16.gmra.mxu1 %v4787_v4  ;;  %3831 = vmatprep.subr.bf16.mxu0 %v4115_v1  ;;  %v2085_v4 = vrot.slane %v4942_v51, 2  ;;  %v2467_v51 = vrot.slane %v4947_v19, 3  ;;  %v4093_v19 = vld [vmem:[%s5576_s2 + $0x1e0] sm:$0xff]  }
 0x150   : > { %3722 = vmatpush3.bf16.msra.mxu1 %v4060_v23  ;;  %3669 = vmatprep.mubr.msk.bf16.mxu1 %vm5629_vm10, %v4115_v1  ;;  %v3272_v23 = vcombine.low %v2442_v21, %v4915_v27  ;;  %v4091_v27 = vld [vmem:[%s5576_s2 + $0x1f0] sm:$0xff]  }
 0x151   : > { %3723 = vmatprep.subr.bf16.mxu1 %v4115_v1  ;;  %v2086_v35 = vsel %vm1880_vm4, %v2084_v50, %v2085_v4  ;;  %v2088_v3 = vsel %vm1880_vm4, %v2085_v4, %v2087_v39  ;;  %v4094_v50 = vld [vmem:[%s5576_s2 + $0x1d8] sm:$0xff]  }
 0x152   : > { %3832 = vmatpush3.bf16.msra.mxu0 %v4064_v40  ;;  %v2464_v59 = vrot.slane %v3272_v23, 3  ;;  %v4102_v23 = vld [vmem:[%s5577_s3 + $0x20] sm:$0xff]  }
 0x153   : > { %3889 = vmatprep.subr.bf16.mxu0 %v4115_v1 }
 0x154   : > { %3724 = vmatpush3.bf16.msra.mxu1 %v4063_v28  ;;  %v2466_v40 = vsel %vm2463_vm7, %v2464_v59, %v2465_v26  ;;  %v2468_v28 = vsel %vm2463_vm7, %v2465_v26, %v2467_v51 }
 0x155   : > { %3778 = vmatmul.mubr.bf16.gmra.mxu0 %v1722_v33  ;;  %3781 = vmatprep.subr.bf16.mxu1 %v4115_v1  ;;  %v4092_v33 = vld [vmem:[%s5576_s2 + $0x1e8] sm:$0xff]  }
 0x156   : > { %3833 = vmatprep.mubr.msk.bf16.mxu0 %vm5629_vm10, %v4115_v1 }
 0x157   : > { %3670 = vmatmul.mubr.bf16.gmra.mxu1 %v4871_v0  ;;  %v4067_v0 = vld [vmem:[%s5576_s2 + $0x178] sm:$0xff]  }
 0x158   : > { %3725 = vmatprep.mubr.msk.bf16.mxu1 %vm5629_vm10, %v4115_v1 }
 0x15d   : > { %3834 = vmatmul.mubr.bf16.vlgmr.msra.gmra.mxu0 %v2086_v35  ;;  %v4098_v35 = vld [vmem:[%s5576_s2 + $0x1c0] sm:$0xff]  }
 0x15e   : > { %3837 = vmatprep.mubr.msk.bf16.mxu0 %vm5629_vm10, %v4115_v1  ;;  %3890 = vmatpush3.bf16.msra.mxu0 %v4070_v34  ;;  %v4096_v34 = vld [vmem:[%s5576_s2 + $0x1c8] sm:$0xff]  }
 0x15f   : > { %3726 = vmatmul.mubr.bf16.vlgmr.msra.gmra.mxu1 %v1503_v24  ;;  %3891 = vmatprep.subr.bf16.mxu0 %v4115_v1 }
 0x160   : > { %3782 = vmatpush3.bf16.msra.mxu1 %v4067_v0  ;;  %3729 = vmatprep.mubr.msk.bf16.mxu1 %vm5629_vm10, %v4115_v1 }
 0x161   : > { %3783 = vmatprep.subr.bf16.mxu1 %v4115_v1 }
 0x162   : > { %3892 = vmatpush3.bf16.msra.mxu0 %v4072_v41 }
 0x163   : > { %3893 = vmatprep.subr.bf16.mxu0 %v4115_v1 }
 0x164   : > { %3784 = vmatpush3.bf16.msra.mxu1 %v4068_v15 }
 0x165   : > { %3838 = vmatmul.mubr.bf16.gmra.mxu0 %v2088_v3  ;;  %3785 = vmatprep.subr.bf16.mxu1 %v4115_v1 }
 0x166   : > { %3841 = vmatprep.mubr.msk.bf16.mxu0 %vm5629_vm10, %v4115_v1  ;;  %3894 = vmatpush3.bf16.msra.mxu0 %v4075_v47 }
 0x167   : > { %3730 = vmatmul.mubr.bf16.gmra.mxu1 %v1505_v48  ;;  %3895 = vmatprep.subr.bf16.mxu0 %v4115_v1 }
 0x168   : > { %3786 = vmatpush3.bf16.msra.mxu1 %v4071_v6  ;;  %3733 = vmatprep.mubr.msk.bf16.mxu1 %vm5629_vm10, %v4115_v1 }
 0x169   : > { %3787 = vmatprep.subr.bf16.mxu1 %v4115_v1 }
 0x16a   : > { %3896 = vmatpush3.bf16.msra.mxu0 %v4076_v56 }
 0x16b   : > { %3897 = vmatprep.subr.bf16.mxu0 %v4115_v1 }
 0x16c   : > { %3788 = vmatpush3.bf16.msra.mxu1 %v4074_v54 }
 0x16d   : > { %3842 = vmatmul.mubr.bf16.gmra.mxu0 %v2090_v62  ;;  %3789 = vmatprep.subr.bf16.mxu1 %v4115_v1 }
 0x16e   : > { %3845 = vmatprep.mubr.msk.bf16.mxu0 %vm5629_vm10, %v4115_v1  ;;  %3898 = vmatpush3.bf16.msra.mxu0 %v4079_v38 }
 0x16f   : > { %3734 = vmatmul.mubr.bf16.gmra.mxu1 %v1507_v2  ;;  %3899 = vmatprep.subr.bf16.mxu0 %v4115_v1 }
 0x170   : > { %3790 = vmatpush3.bf16.msra.mxu1 %v4077_v37  ;;  %3737 = vmatprep.mubr.msk.bf16.mxu1 %vm5629_vm10, %v4115_v1 }
 0x171   : > { %3791 = vmatprep.subr.bf16.mxu1 %v4115_v1 }
 0x172   : > { %3900 = vmatpush3.bf16.msra.mxu0 %v4081_v16  ;;  %v4099_v16 = vld [vmem:[%s5577_s3 + $0x38] sm:$0xff]  }
 0x173   : > { %3901 = vmatprep.subr.bf16.mxu0 %v4115_v1 }
 0x174   : > { %3792 = vmatpush3.bf16.msra.mxu1 %v4080_v55 }
 0x175   : > { %3846 = vmatmul.mubr.bf16.gmra.mxu0 %v2092_v9  ;;  %3793 = vmatprep.subr.bf16.mxu1 %v4115_v1 }
 0x176   : > { %3849 = vmatprep.mubr.msk.bf16.mxu0 %vm5629_vm10, %v4115_v1  ;;  %3902 = vmatpush3.bf16.msra.mxu0 %v4084_v11 }
 0x177   : > { %3738 = vmatmul.mubr.bf16.gmra.mxu1 %v1509_v29  ;;  %3903 = vmatprep.subr.bf16.mxu0 %v4115_v1 }
 0x178   : > { %3794 = vmatpush3.bf16.msra.mxu1 %v4082_v13  ;;  %3741 = vmatprep.mubr.msk.bf16.mxu1 %vm5629_vm10, %v4115_v1 }
 0x179   : > { %3795 = vmatprep.subr.bf16.mxu1 %v4115_v1 }
 0x17a   : > { %3904 = vmatpush3.bf16.msra.mxu0 %v4087_v53 }
 0x17b   : > { %3925 = vmatprep.subr.bf16.mxu0 %v4115_v1 }
 0x17c   : > { %3796 = vmatpush3.bf16.msra.mxu1 %v4086_v42  ;;  %v4101_v42 = vld [vmem:[%s5577_s3 + $0x28] sm:$0xff]  }
 0x17d   : > { %3850 = vmatmul.mubr.bf16.gmra.mxu0 %v2094_v52  ;;  %3853 = vmatprep.subr.bf16.mxu1 %v4115_v1 }
 0x17e   : > { %3905 = vmatprep.mubr.msk.bf16.mxu0 %vm5629_vm10, %v4115_v1 }
 0x17f   : > { %3742 = vmatmul.mubr.bf16.gmra.mxu1 %v1511_v22 }
 0x180   : > { %3797 = vmatprep.mubr.msk.bf16.mxu1 %vm5629_vm10, %v4115_v1 }
 0x185   : > { %3906 = vmatmul.mubr.bf16.vlgmr.msra.gmra.mxu0 %v2466_v40 }
 0x186   : > { %3909 = vmatprep.mubr.msk.bf16.mxu0 %vm5629_vm10, %v4115_v1  ;;  %3926 = vmatpush3.bf16.msra.mxu0 %v4099_v16 }
 0x187   : > { %3798 = vmatmul.mubr.bf16.vlgmr.msra.gmra.mxu1 %v4880_v18  ;;  %v2469_v18 = vrot.slane %v4952_v10, 3  ;;  %v4095_v10 = vld [vmem:[%s5576_s2 + $0x1d0] sm:$0xff]   ;;  %3927 = vmatprep.subr.bf16.mxu0 %v4115_v1 }
 0x188   : > { %3854 = vmatpush3.bf16.msra.mxu1 %v4090_v12  ;;  %3801 = vmatprep.mubr.msk.bf16.mxu1 %vm5629_vm10, %v4115_v1 }
 0x189   : > { %3855 = vmatprep.subr.bf16.mxu1 %v4115_v1  ;;  %v2470_v4 = vsel %vm2463_vm7, %v2467_v51, %v2469_v18 }
 0x18a   : > { %3928 = vmatpush3.bf16.msra.mxu0 %v4100_v57 }
 0x18b   : > { %3929 = vmatprep.subr.bf16.mxu0 %v4115_v1 }
 0x18c   : > { %3856 = vmatpush3.bf16.msra.mxu1 %v4091_v27 }
 0x18d   : > { %3910 = vmatmul.mubr.bf16.gmra.mxu0 %v2468_v28  ;;  %3857 = vmatprep.subr.bf16.mxu1 %v4115_v1 }
 0x18e   : > { %3913 = vmatprep.mubr.msk.bf16.mxu0 %vm5629_vm10, %v4115_v1  ;;  %3930 = vmatpush3.bf16.msra.mxu0 %v4101_v42 }
 0x18f   : > { %3802 = vmatmul.mubr.bf16.gmra.mxu1 %v4909_v14  ;;  %v2471_v14 = vrot.slane %v4959_v32, 3  ;;  %3931 = vmatprep.subr.bf16.mxu0 %v4115_v1 }
 0x190   : > { %3858 = vmatpush3.bf16.msra.mxu1 %v4092_v33  ;;  %3805 = vmatprep.mubr.msk.bf16.mxu1 %vm5629_vm10, %v4115_v1 }
 0x191   : > { %3859 = vmatprep.subr.bf16.mxu1 %v4115_v1  ;;  %v2472_v31 = vsel %vm2463_vm7, %v2469_v18, %v2471_v14 }
 0x192   : > { %3932 = vmatpush3.bf16.msra.mxu0 %v4102_v23 }
 0x193   : > { %3933 = vmatprep.subr.bf16.mxu0 %v4115_v1 }
 0x194   : > { %3860 = vmatpush3.bf16.msra.mxu1 %v4093_v19 }
 0x195   : > { %3914 = vmatmul.mubr.bf16.gmra.mxu0 %v2470_v4  ;;  %3861 = vmatprep.subr.bf16.mxu1 %v4115_v1 }
 0x196   : > { %3917 = vmatprep.mubr.msk.bf16.mxu0 %vm5629_vm10, %v4115_v1 }
 0x197   : > { %3806 = vmatmul.mubr.bf16.gmra.mxu1 %v4924_v30  ;;  %v4097_v30 = vld [vmem:[#allocation2 + $0x30] ss:$0 sps:$4 sm:$0x77]  }
 0x198   : > { %3862 = vmatpush3.bf16.msra.mxu1 %v4094_v50  ;;  %3809 = vmatprep.mubr.msk.bf16.mxu1 %vm5629_vm10, %v4115_v1  ;;  %v2473_v32 = vrot.slane %v4097_v30, 3  ;;  %v4103_v50 = vld [vmem:[%s5577_s3 + $0x18] sm:$0xff]  }
 0x199   : > { %3863 = vmatprep.subr.bf16.mxu1 %v4115_v1  ;;  %3934 = vmatpush3.bf16.msra.mxu0 %v4103_v50 }
 0x19a   : > { %v2474_v36 = vsel %vm2463_vm7, %v2471_v14, %v2473_v32  ;;  %3935 = vmatprep.subr.bf16.mxu0 %v4115_v1 }
 0x19c   : > { %3864 = vmatpush3.bf16.msra.mxu1 %v4095_v10 }
 0x19d   : > { %3918 = vmatmul.mubr.bf16.gmra.mxu0 %v2472_v31  ;;  %3865 = vmatprep.subr.bf16.mxu1 %v4115_v1 }
 0x19e   : > { %3921 = vmatprep.mubr.msk.bf16.mxu0 %vm5629_vm10, %v4115_v1 }
 0x19f   : > { %3810 = vmatmul.mubr.bf16.gmra.mxu1 %v4945_v63  ;;  %v2298_v63 = vshrl.u32 %v4097_v30, 16 }
 0x1a0   : > { %3866 = vmatpush3.bf16.msra.mxu1 %v4096_v34  ;;  %3813 = vmatprep.mubr.msk.bf16.mxu1 %vm5629_vm10, %v4115_v1 }
 0x1a1   : > { %3867 = vmatprep.subr.bf16.mxu1 %v4115_v1  ;;  %v2300_v0 = vrot.slane %v2298_v63, 2 }
 0x1a4   : > { %3868 = vmatpush3.bf16.msra.mxu1 %v4098_v35 }
 0x1a5   : > { %3922 = vmatmul.mubr.bf16.gmra.mxu0 %v2474_v36  ;;  %3961 = vmatprep.subr.bf16.mxu1 %v4115_v1 }
 0x1a6   : > { %3941 = vmatprep.mubr.msk.bf16.mxu0 %vm5629_vm10, %v4115_v1 }
 0x1a7   : > { %3814 = vmatmul.mubr.bf16.gmra.mxu1 %v4962_v7  ;;  %v2301_v7 = vshll.u32 %v4097_v30, 16 }
 0x1a8   : > { %3869 = vmatprep.mubr.msk.bf16.mxu1 %vm5629_vm10, %v4115_v1 }
 0x1a9   : > { %v2303_v24 = vrot.slane %v2301_v7, 3  ;;  %v4104_v7 = vld [vmem:[%s5577_s3 + $0x10] sm:$0xff]  }
 0x1aa   : > { %3936 = vmatpush3.bf16.msra.mxu0 %v4104_v7 }
 0x1ab   : > { %3937 = vmatprep.subr.bf16.mxu0 %v4115_v1 }
 0x1af   : > { %3870 = vmatmul.mubr.bf16.vlgmr.msra.gmra.mxu1 %v4992_v45  ;;  %v2304_v45 = vor.u32 %v2303_v24, %v2300_v0 }
 0x1b0   : > { %3873 = vmatprep.mubr.msk.bf16.mxu1 %vm5629_vm10, %v4115_v1  ;;  %3969 = vmatpush3.bf16.msra.mxu1 %v4099_v16 }
 0x1b1   : > { %3962 = vmatprep.subr.bf16.mxu1 %v4115_v1 }
 0x1b4   : > { %3970 = vmatpush3.bf16.msra.mxu1 %v4100_v57 }
 0x1b5   : > { %3963 = vmatprep.subr.bf16.mxu1 %v4115_v1 }
 0x1b7   : > { %3874 = vmatmul.mubr.bf16.gmra.mxu1 %v4998_v5  ;;  %v2305_v5 = vsel %vm2252_vm11, %v5000_v44, %v2304_v45 }
 0x1b8   : > { %3877 = vmatprep.mubr.msk.bf16.mxu1 %vm5629_vm10, %v4115_v1  ;;  %3971 = vmatpush3.bf16.msra.mxu1 %v4101_v42 }
 0x1b9   : > { %3964 = vmatprep.subr.bf16.mxu1 %v4115_v1 }
 0x1bc   : > { %3972 = vmatpush3.bf16.msra.mxu1 %v4102_v23 }
 0x1bd   : > { %3965 = vmatprep.subr.bf16.mxu1 %v4115_v1 }
 0x1bf   : > { %3878 = vmatmul.mubr.bf16.gmra.mxu1 %v5004_v49 }
 0x1c0   : > { %3881 = vmatprep.mubr.msk.bf16.mxu1 %vm5629_vm10, %v4115_v1  ;;  %3973 = vmatpush3.bf16.msra.mxu1 %v4103_v50 }
 0x1c1   : > { %3966 = vmatprep.subr.bf16.mxu1 %v4115_v1 }
 0x1c4   : > { %3974 = vmatpush3.bf16.msra.mxu1 %v4104_v7 }
 0x1c5   : > { %3967 = vmatprep.subr.bf16.mxu1 %v4115_v1 }
 0x1c7   : > { %3882 = vmatmul.mubr.bf16.gmra.mxu1 %v5012_v46 }
 0x1c8   : > { %3885 = vmatprep.mubr.msk.bf16.mxu1 %vm5629_vm10, %v4115_v1 }
 0x1cd   : > { %v5267_v41 = vpop.f32.mrf.mxu0 }
 0x1cf   : > { %v5271_v15 = vpop.f32.mrf.mxu1  ;;  %v3691_v49 = vpop.f32.mrf.mxu0  ;;  %3886 = vmatmul.mubr.bf16.gmra.mxu1 %v2305_v5 }
 0x1d0   : > { %3945 = vmatprep.mubr.msk.bf16.mxu1 %vm5629_vm10, %v4115_v1 }
 0x1d1   : > { %v3619_v39 = vpop.f32.mrf.mxu1  ;;  %v5275_v43 = vpop.f32.mrf.mxu0 }
 0x1d3   : > { %v5277_v46 = vpop.f32.mrf.mxu1  ;;  %v3692_v47 = vpop.f32.mrf.mxu0 }
 0x1d5   : > { %v3620_v3 = vpop.f32.mrf.mxu1  ;;  %v5279_v6 = vpop.f32.mrf.mxu0 }
 0x1d7   : > { %v5281_v48 = vpop.f32.mrf.mxu1  ;;  %v3695_v56 = vpop.f32.mrf.mxu0 }
 0x1d9   : > { %v3623_v44 = vpop.f32.mrf.mxu1  ;;  %v5283_v17 = vpop.f32.mrf.mxu0 }
 0x1db   : > { %v5285_v54 = vpop.f32.mrf.mxu1  ;;  %v3696_v58 = vpop.f32.mrf.mxu0 }
 0x1dd   : > { %v3624_v38 = vpop.f32.mrf.mxu1  ;;  %v5287_v62 = vpop.f32.mrf.mxu0 }
 0x1df   : > { %v5289_v37 = vpop.f32.mrf.mxu1  ;;  %v3699_v2 = vpop.f32.mrf.mxu0 }
 0x1e1   : > { %v3627_v60 = vpop.f32.mrf.mxu1  ;;  %v5294_v55 = vpop.f32.mrf.mxu0 }
 0x1e3   : > { %v5296_v8 = vpop.f32.mrf.mxu1  ;;  %v3700_v11 = vpop.f32.mrf.mxu0 }
 0x1e5   : > { %v3628_v9 = vpop.f32.mrf.mxu1  ;;  %v5300_v13 = vpop.f32.mrf.mxu0 }
 0x1e7   : > { %v5305_v29 = vpop.f32.mrf.mxu1  ;;  %v3703_v20 = vpop.f32.mrf.mxu0 }
 0x1e9   : > { %v3631_v53 = vpop.f32.mrf.mxu1  ;;  %v5309_v25 = vpop.f32.mrf.mxu0 }
 0x1eb   : > { %v5314_v61 = vpop.f32.mrf.mxu1  ;;  %v3704_v21 = vpop.f32.mrf.mxu0 }
 0x1ed   : > { %v3632_v52 = vpop.f32.mrf.mxu1  ;;  %v5318_v22 = vpop.f32.mrf.mxu0 }
 0x1ef   : > { %v5323_v26 = vpop.f32.mrf.mxu1  ;;  %v3707_v59 = vpop.f32.mrf.mxu0 }
 0x1f1   : > { %v3635_v40 = vpop.f32.mrf.mxu1  ;;  %v5327_v12 = vpop.f32.mrf.mxu0 }
 0x1f3   : > { %v5329_v27 = vpop.f32.mrf.mxu1  ;;  %v3708_v51 = vpop.f32.mrf.mxu0 }
 0x1f5   : > { %v3636_v28 = vpop.f32.mrf.mxu1  ;;  %v5331_v33 = vpop.f32.mrf.mxu0 }
 0x1f7   : > { %v1237_v18 = vpop.f32.mrf.mxu1  ;;  %v3763_v19 = vpop.f32.mrf.mxu0 }
 0x1f8   : > { %v1238_v4 = vadd.f32 %v1237_v18, %v5271_v15 }
 0x1f9   : > { %v3655_v14 = vpop.f32.mrf.mxu1  ;;  %v5337_v10 = vpop.f32.mrf.mxu0 }
 0x1fa   : > { %v5340_v31 = vadd.f32 %v5267_v41, %v1238_v4  ;;  %v4105_v41 = vld [vmem:[%s5577_s3 + $0x8] sm:$0xff]  }
 0x1fb   : > { %v1240_v34 = vpop.f32.mrf.mxu1  ;;  %v3764_v30 = vpop.f32.mrf.mxu0  ;;  %3938 = vmatpush3.bf16.msra.mxu0 %v4105_v41  ;;  %3975 = vmatpush3.bf16.msra.mxu1 %v4105_v41 }
 0x1fc   : > { %v1241_v32 = vadd.f32 %v1240_v34, %v5277_v46  ;;  %3939 = vmatprep.subr.bf16.mxu0 %v4115_v1  ;;  %3968 = vmatprep.subr.bf16.mxu1 %v4115_v1 }
 0x1fd   : > { %v3656_v35 = vpop.f32.mrf.mxu1  ;;  %v5345_v36 = vpop.f32.mrf.mxu0 }
 0x1fe   : > { %v5348_v63 = vadd.f32 %v5275_v43, %v1241_v32 }
 0x1ff   : > { %v1245_v0 = vpop.f32.mrf.mxu1  ;;  %v3767_v24 = vpop.f32.mrf.mxu0 }
 0x200   : > { %v1246_v45 = vadd.f32 %v1245_v0, %v5281_v48 }
 0x201   : > { %v3659_v5 = vpop.f32.mrf.mxu1  ;;  %v5357_v15 = vpop.f32.mrf.mxu0 }
 0x202   : > { %v5362_v49 = vadd.f32 %v5279_v6, %v1246_v45  ;;  %v4106_v6 = vld [vmem:[%s5577_s3] sm:$0xff]  }
 0x203   : > { %v1248_v39 = vpop.f32.mrf.mxu1  ;;  %v3768_v43 = vpop.f32.mrf.mxu0  ;;  %3940 = vmatpush3.bf16.msra.mxu0 %v4106_v6  ;;  %3976 = vmatpush3.bf16.msra.mxu1 %v4106_v6 }
 0x204   : > { %v1249_v46 = vadd.f32 %v1248_v39, %v5285_v54 }
 0x205   : > { %v3660_v47 = vpop.f32.mrf.mxu1  ;;  %v5365_v3 = vpop.f32.mrf.mxu0 }
 0x206   : > { %v1438_v48 = vadd.f32 %v5283_v17, %v1249_v46 }
 0x207   : > { %v1253_v56 = vpop.f32.mrf.mxu1  ;;  %v3771_v44 = vpop.f32.mrf.mxu0 }
 0x208   : > { %v1254_v58 = vadd.f32 %v1253_v56, %v5289_v37 }
 0x209   : > { %v3663_v54 = vpop.f32.mrf.mxu1  ;;  %v5374_v38 = vpop.f32.mrf.mxu0 }
 0x20a   : > { %v1439_v2 = vadd.f32 %v5287_v62, %v1254_v58 }
 0x20b   : > { %v1256_v16 = vpop.f32.mrf.mxu1  ;;  %v3772_v60 = vpop.f32.mrf.mxu0 }
 0x20c   : > { %v1257_v11 = vadd.f32 %v1256_v16, %v5296_v8 }
 0x20d   : > { %v3664_v17 = vpop.f32.mrf.mxu1  ;;  %v5378_v9 = vpop.f32.mrf.mxu0 }
 0x20e   : > { %v1440_v57 = vadd.f32 %v5294_v55, %v1257_v11 }
 0x20f   : > { %v1261_v20 = vpop.f32.mrf.mxu1  ;;  %v3775_v53 = vpop.f32.mrf.mxu0 }
 0x210   : > { %v1262_v37 = vadd.f32 %v1261_v20, %v5305_v29 }
 0x211   : > { %v3667_v42 = vpop.f32.mrf.mxu1  ;;  %v5382_v21 = vpop.f32.mrf.mxu0 }
 0x212   : > { %v1441_v52 = vadd.f32 %v5300_v13, %v1262_v37 }
 0x213   : > { %v1264_v23 = vpop.f32.mrf.mxu1  ;;  %v3776_v62 = vpop.f32.mrf.mxu0 }
 0x214   : > { %v1265_v59 = vadd.f32 %v1264_v23, %v5314_v61 }
 0x215   : > { %v3668_v40 = vpop.f32.mrf.mxu1  ;;  %v5386_v8 = vpop.f32.mrf.mxu0 }
 0x216   : > { %v1442_v51 = vadd.f32 %v5309_v25, %v1265_v59 }
 0x217   : > { %v1269_v28 = vpop.f32.mrf.mxu1  ;;  %v3779_v55 = vpop.f32.mrf.mxu0 }
 0x218   : > { %v1270_v18 = vadd.f32 %v1269_v28, %v5323_v26 }
 0x219   : > { %v3671_v19 = vpop.f32.mrf.mxu1  ;;  %v5390_v29 = vpop.f32.mrf.mxu0 }
 0x21a   : > { %v1443_v4 = vadd.f32 %v5318_v22, %v1270_v18 }
 0x21b   : > { %v1272_v50 = vpop.f32.mrf.mxu1  ;;  %v3780_v13 = vpop.f32.mrf.mxu0 }
 0x21c   : > { %v1273_v14 = vadd.f32 %v1272_v50, %v5329_v27 }
 0x21d   : > { %v3672_v34 = vpop.f32.mrf.mxu1  ;;  %v5394_v61 = vpop.f32.mrf.mxu0 }
 0x21e   : > { %v1444_v30 = vadd.f32 %v5327_v12, %v1273_v14 }
 0x21f   : > { %v1599_v32 = vpop.f32.mrf.mxu1  ;;  %v3835_v25 = vpop.f32.mrf.mxu0 }
 0x220   : > { %v1638_v35 = vadd.f32 %v1599_v32, %v5340_v31 }
 0x221   : > { %v3727_v7 = vpop.f32.mrf.mxu1  ;;  %v5398_v26 = vpop.f32.mrf.mxu0 }
 0x222   : > { %v1849_v0 = vadd.f32 %v5331_v33, %v1638_v35 }
 0x223   : > { %v1602_v24 = vpop.f32.mrf.mxu1  ;;  %v3836_v22 = vpop.f32.mrf.mxu0 }
 0x224   : > { %v1639_v45 = vadd.f32 %v1602_v24, %v5348_v63 }
 0x225   : > { %v3728_v41 = vpop.f32.mrf.mxu1  ;;  %v5402_v27 = vpop.f32.mrf.mxu0 }
 0x226   : > { %v1850_v5 = vadd.f32 %v5337_v10, %v1639_v45 }
 0x227   : > { %v1607_v39 = vpop.f32.mrf.mxu1  ;;  %v3839_v12 = vpop.f32.mrf.mxu0 }
 0x228   : > { %v1640_v43 = vadd.f32 %v1607_v39, %v5362_v49 }
 0x229   : > { %v3731_v46 = vpop.f32.mrf.mxu1  ;;  %v5406_v31 = vpop.f32.mrf.mxu0 }
 0x22a   : > { %v1851_v47 = vadd.f32 %v5345_v36, %v1640_v43 }
 0x22b   : > { %v1610_v6 = vpop.f32.mrf.mxu1  ;;  %v3840_v33 = vpop.f32.mrf.mxu0 }
 0x22c   : > { %v1641_v56 = vadd.f32 %v1610_v6, %v1438_v48 }
 0x22d   : > { %v3732_v44 = vpop.f32.mrf.mxu1  ;;  %v5409_v58 = vpop.f32.mrf.mxu0 }
 0x22e   : > { %v1852_v63 = vadd.f32 %v5357_v15, %v1641_v56 }
 0x22f   : > { %v1615_v54 = vpop.f32.mrf.mxu1  ;;  %v3843_v16 = vpop.f32.mrf.mxu0 }
 0x230   : > { %v1642_v10 = vadd.f32 %v1615_v54, %v1439_v2 }
 0x231   : > { %v3735_v60 = vpop.f32.mrf.mxu1  ;;  %v5412_v11 = vpop.f32.mrf.mxu0 }
 0x232   : > { %v1853_v49 = vadd.f32 %v5365_v3, %v1642_v10 }
 0x233   : > { %v1618_v17 = vpop.f32.mrf.mxu1  ;;  %v3844_v20 = vpop.f32.mrf.mxu0 }
 0x234   : > { %v1643_v53 = vadd.f32 %v1618_v17, %v1440_v57 }
 0x235   : > { %v3736_v36 = vpop.f32.mrf.mxu1  ;;  %v5415_v37 = vpop.f32.mrf.mxu0 }
 0x236   : > { %v1854_v48 = vadd.f32 %v5374_v38, %v1643_v53 }
 0x237   : > { %v1623_v42 = vpop.f32.mrf.mxu1  ;;  %v3847_v23 = vpop.f32.mrf.mxu0 }
 0x238   : > { %v1644_v62 = vadd.f32 %v1623_v42, %v1441_v52 }
 0x239   : > { %v3739_v15 = vpop.f32.mrf.mxu1  ;;  %v5418_v59 = vpop.f32.mrf.mxu0 }
 0x23a   : > { %v1855_v2 = vadd.f32 %v5378_v9, %v1644_v62 }
 0x23b   : > { %v1626_v40 = vpop.f32.mrf.mxu1  ;;  %v3848_v28 = vpop.f32.mrf.mxu0 }
 0x23c   : > { %v1645_v55 = vadd.f32 %v1626_v40, %v1442_v51 }
 0x23d   : > { %v3740_v3 = vpop.f32.mrf.mxu1  ;;  %v5421_v18 = vpop.f32.mrf.mxu0 }
 0x23e   : > { %v1856_v57 = vadd.f32 %v5382_v21, %v1645_v55 }
 0x23f   : > { %v1631_v19 = vpop.f32.mrf.mxu1  ;;  %v3851_v50 = vpop.f32.mrf.mxu0 }
 0x240   : > { %v1646_v13 = vadd.f32 %v1631_v19, %v1443_v4 }
 0x241   : > { %v3743_v38 = vpop.f32.mrf.mxu1  ;;  %v5424_v14 = vpop.f32.mrf.mxu0 }
 0x242   : > { %v1857_v52 = vadd.f32 %v5386_v8, %v1646_v13 }
 0x243   : > { %v1634_v34 = vpop.f32.mrf.mxu1  ;;  %v3852_v32 = vpop.f32.mrf.mxu0 }
 0x244   : > { %v1647_v25 = vadd.f32 %v1634_v34, %v1444_v30 }
 0x245   : > { %v3744_v9 = vpop.f32.mrf.mxu1  ;;  %v5427_v35 = vpop.f32.mrf.mxu0 }
 0x246   : > { %v1858_v51 = vadd.f32 %v5390_v29, %v1647_v25 }
 0x247   : > { %v1979_v7 = vpop.f32.mrf.mxu1  ;;  %v3907_v24 = vpop.f32.mrf.mxu0 }
 0x248   : > { %v2018_v22 = vadd.f32 %v1979_v7, %v1849_v0 }
 0x249   : > { %v3799_v21 = vpop.f32.mrf.mxu1  ;;  %v5430_v45 = vpop.f32.mrf.mxu0 }
 0x24a   : > { %v2221_v4 = vadd.f32 %v5394_v61, %v2018_v22 }
 0x24b   : > { %v1982_v41 = vpop.f32.mrf.mxu1  ;;  %v3908_v39 = vpop.f32.mrf.mxu0 }
 0x24c   : > { %v2019_v12 = vadd.f32 %v1982_v41, %v1850_v5 }
 0x24d   : > { %v3800_v8 = vpop.f32.mrf.mxu1  ;;  %v5433_v43 = vpop.f32.mrf.mxu0 }
 0x24e   : > { %v2222_v30 = vadd.f32 %v5398_v26, %v2019_v12 }
 0x24f   : > { %v1987_v46 = vpop.f32.mrf.mxu1  ;;  %v3911_v6 = vpop.f32.mrf.mxu0 }
 0x250   : > { %v2020_v33 = vadd.f32 %v1987_v46, %v1851_v47 }
 0x251   : > { %v3803_v29 = vpop.f32.mrf.mxu1  ;;  %v5436_v56 = vpop.f32.mrf.mxu0 }
 0x252   : > { %v2223_v0 = vadd.f32 %v5402_v27, %v2020_v33 }
 0x253   : > { %v1990_v44 = vpop.f32.mrf.mxu1  ;;  %v3912_v54 = vpop.f32.mrf.mxu0 }
 0x254   : > { %v2021_v16 = vadd.f32 %v1990_v44, %v1852_v63 }
 0x255   : > { %v3804_v61 = vpop.f32.mrf.mxu1  ;;  %v5439_v10 = vpop.f32.mrf.mxu0 }
 0x256   : > { %v2224_v5 = vadd.f32 %v5406_v31, %v2021_v16 }
 0x257   : > { %v1995_v60 = vpop.f32.mrf.mxu1  ;;  %v3915_v17 = vpop.f32.mrf.mxu0 }
 0x258   : > { %v2022_v20 = vadd.f32 %v1995_v60, %v1853_v49 }
 0x259   : > { %v3807_v26 = vpop.f32.mrf.mxu1  ;;  %v5442_v53 = vpop.f32.mrf.mxu0 }
 0x25a   : > { %v2225_v47 = vadd.f32 %v5409_v58, %v2022_v20 }
 0x25b   : > { %v1998_v36 = vpop.f32.mrf.mxu1  ;;  %v3916_v42 = vpop.f32.mrf.mxu0 }
 0x25c   : > { %v2023_v23 = vadd.f32 %v1998_v36, %v1854_v48 }
 0x25d   : > { %v3808_v27 = vpop.f32.mrf.mxu1  ;;  %v5445_v62 = vpop.f32.mrf.mxu0 }
 0x25e   : > { %v2226_v63 = vadd.f32 %v5412_v11, %v2023_v23 }
 0x25f   : > { %v2003_v15 = vpop.f32.mrf.mxu1  ;;  %v3919_v40 = vpop.f32.mrf.mxu0 }
 0x260   : > { %v2024_v28 = vadd.f32 %v2003_v15, %v1855_v2 }
 0x261   : > { %v3811_v31 = vpop.f32.mrf.mxu1  ;;  %v5448_v55 = vpop.f32.mrf.mxu0 }
 0x262   : > { %v2227_v49 = vadd.f32 %v5415_v37, %v2024_v28 }
 0x263   : > { %v2006_v3 = vpop.f32.mrf.mxu1  ;;  %v3920_v19 = vpop.f32.mrf.mxu0 }
 0x264   : > { %v2025_v50 = vadd.f32 %v2006_v3, %v1856_v57 }
 0x265   : > { %v3812_v58 = vpop.f32.mrf.mxu1  ;;  %v5451_v13 = vpop.f32.mrf.mxu0 }
 0x266   : > { %v5454_v48 = vadd.f32 %v5418_v59, %v2025_v50  ;;  %v5467_v59 = vld [vmem:[%s5580_s6] ss:$0 sm:$0xff] }
 0x267   : > { %v2011_v38 = vpop.f32.mrf.mxu1  ;;  %v3923_v34 = vpop.f32.mrf.mxu0 }
 0x268   : > { %v2026_v11 = vadd.f32 %v2011_v38, %v1857_v52 }
 0x269   : > { %v3815_v32 = vpop.f32.mrf.mxu1  ;;  %v5456_v25 = vpop.f32.mrf.mxu0 }
 0x26a   : > { %v5459_v2 = vadd.f32 %v5421_v18, %v2026_v11 }
 0x26b   : > { %v2014_v9 = vpop.f32.mrf.mxu1  ;;  %v3924_v37 = vpop.f32.mrf.mxu0 }
 0x26c   : > { %v2027_v7 = vadd.f32 %v2014_v9, %v1858_v51  ;;  %v5474_v51 = vld [vmem:[%s5581_s7] ss:$0 sm:$0xff] }
 0x26d   : > { %v3816_v24 = vpop.f32.mrf.mxu1 }
 0x26e   : > { %v5462_v57 = vadd.f32 %v5424_v14, %v2027_v7 }
 0x26f   : > { %v2393_v22 = vpop.f32.mrf.mxu1 }
 0x270   : > { %v2432_v21 = vadd.f32 %v2393_v22, %v2221_v4 }
 0x271   : > { %v3871_v52 = vpop.f32.mrf.mxu1 }
 0x272   : > { %v2601_v41 = vadd.f32 %v5427_v35, %v2432_v21 }
 0x273   : > { %v2396_v39 = vpop.f32.mrf.mxu1 }
 0x274   : > { %v2618_v18 = vmul.f32 %v5467_v59, %v2601_v41  ;;  %v2433_v12 = vadd.f32 %v2396_v39, %v2222_v30 }
 0x275   : > { %v3872_v14 = vpop.f32.mrf.mxu1 }
 0x276   : > { %v2602_v4 = vadd.f32 %v5430_v45, %v2433_v12  ;;  %v2635_v46 = vadd.f32 %v5474_v51, %v2618_v18 }
 0x277   : > { %v2401_v8 = vpop.f32.mrf.mxu1 }
 0x278   : > { %v2619_v6 = vmul.f32 %v5467_v59, %v2602_v4  ;;  %v2434_v33 = vadd.f32 %v2401_v8, %v2223_v0  ;;  %v2645_v54 = vmax.f32 %v2635_v46, 0.0 }
 0x279   : > { %v3875_v29 = vpop.f32.mrf.mxu1 }
 0x27a   : > { %v2636_v35 = vadd.f32 %v5474_v51, %v2619_v6  ;;  %v2603_v44 = vadd.f32 %v5433_v43, %v2434_v33 }
 0x27b   : > { %v2404_v30 = vpop.f32.mrf.mxu1 }
 0x27c   : > { %v2646_v16 = vmax.f32 %v2636_v35, 0.0  ;;  %v2620_v61 = vmul.f32 %v5467_v59, %v2603_v44  ;;  %v2435_v60 = vadd.f32 %v2404_v30, %v2224_v5  ;;  %v2797_v44 = vld [vmem:[%s4203_s24 + $0x4] sm:$0xe]  ;;  %v3404_v30 = vld [vmem:[%s4203_s24 + $0x8] sm:$0xff]  }
 0x27d   : > { %v3876_v17 = vpop.f32.mrf.mxu1 }
 0x27e   : > { %v2655_v20 = vpack.c.bf16 %v2646_v16, %v2645_v54  ;;  %v2604_v45 = vadd.f32 %v5436_v56, %v2435_v60  ;;  %v2637_v36 = vadd.f32 %v5474_v51, %v2620_v61  ;;  %v3360_v54 = vunpack.c.l.bf16 %v3404_v30  ;;  %v5518_v16 = vld [vmem:[%s5582_s8] ss:$0 sm:$0xff] }
 0x27f   : > { %v2409_v26 = vpop.f32.mrf.mxu1 }
 0x280   : > { %v2621_v0 = vmul.f32 %v5467_v59, %v2604_v45  ;;  %v2436_v42 = vadd.f32 %v2409_v26, %v2225_v47  ;;  %3942 = vmatmul.mubr.bf16.vlgmr.msra.gmra.mxu0 %v2655_v20  ;;  %v2647_v40 = vmax.f32 %v2637_v36, 0.0  ;;  %v2866_v60 = vrot.slane %v3360_v54, 3  ;;  %v3405_v20 = vld [vmem:[%s4203_s24 + $0x10] sm:$0xff]  }
 0x281   : > { %v3879_v23 = vpop.f32.mrf.mxu1 }
 0x282   : > { %v2638_v43 = vadd.f32 %v5474_v51, %v2621_v0  ;;  %v2605_v27 = vadd.f32 %v5439_v10, %v2436_v42  ;;  %v3364_v23 = vunpack.c.l.bf16 %v3405_v20 }
 0x283   : > { %v2412_v15 = vpop.f32.mrf.mxu1 }
 0x284   : > { %v2648_v28 = vmax.f32 %v2638_v43, 0.0  ;;  %v2622_v5 = vmul.f32 %v5467_v59, %v2605_v27  ;;  %v2437_v31 = vadd.f32 %v2412_v15, %v2226_v63 }
 0x285   : > { %v3880_v3 = vpop.f32.mrf.mxu1 }
 0x286   : > { %v2656_v56 = vpack.c.bf16 %v2648_v28, %v2647_v40  ;;  %v2606_v19 = vadd.f32 %v5442_v53, %v2437_v31  ;;  %v2639_v38 = vadd.f32 %v5474_v51, %v2622_v5  ;;  %v3365_v40 = vunpack.c.h.bf16 %v3405_v20 }
 0x287   : > { %v2417_v50 = vpop.f32.mrf.mxu1  ;;  %v2870_v3 = vrot.slane %v3364_v23, 3 }
 0x288   : > { %v2623_v58 = vmul.f32 %v5467_v59, %v2606_v19  ;;  %v2438_v47 = vadd.f32 %v2417_v50, %v2227_v49  ;;  %3946 = vmatmul.mubr.bf16.vlgmr.msra.gmra.mxu1 %v2656_v56  ;;  %v2649_v9 = vmax.f32 %v2639_v38, 0.0  ;;  %v3406_v50 = vld [vmem:[%s4203_s24 + $0x18] sm:$0xff]  }
 0x289   : > { %v3883_v34 = vpop.f32.mrf.mxu1  ;;  %3949 = vmatprep.mubr.msk.bf16.mxu1 %vm5629_vm10, %v4115_v1 }
 0x28a   : > { %v2607_v10 = vadd.f32 %v5445_v62, %v2438_v47  ;;  %v2640_v11 = vadd.f32 %v5474_v51, %v2623_v58  ;;  %v2872_v47 = vrot.slane %v3365_v40, 3 }
 0x28b   : > { %v2420_v63 = vpop.f32.mrf.mxu1 }
 0x28c   : > { %v2624_v32 = vmul.f32 %v5467_v59, %v2607_v10  ;;  %v2439_v53 = vadd.f32 %v2420_v63, %v5454_v48  ;;  %v2650_v37 = vmax.f32 %v2640_v11, 0.0 }
 0x28d   : > { %v3884_v7 = vpop.f32.mrf.mxu1 }
 0x28e   : > { %v2608_v49 = vadd.f32 %v5448_v55, %v2439_v53  ;;  %v2657_v24 = vpack.c.bf16 %v2650_v37, %v2649_v9  ;;  %v2641_v62 = vadd.f32 %v5474_v51, %v2624_v32  ;;  %v3368_v32 = vunpack.c.l.bf16 %v3406_v50 }
 0x28f   : > { %v2425_v22 = vpop.f32.mrf.mxu1  ;;  %v2873_v37 = vsel %vm2463_vm7, %v2870_v3, %v2872_v47 }
 0x290   : > { %v2625_v21 = vmul.f32 %v5467_v59, %v2608_v49  ;;  %v2440_v52 = vadd.f32 %v2425_v22, %v5459_v2  ;;  %3950 = vmatmul.mubr.bf16.gmra.mxu1 %v2657_v24  ;;  %v2651_v14 = vmax.f32 %v2641_v62, 0.0  ;;  %v3369_v49 = vunpack.c.h.bf16 %v3406_v50 }
 0x291   : > { %v3887_v41 = vpop.f32.mrf.mxu1  ;;  %3953 = vmatprep.mubr.msk.bf16.mxu1 %vm5629_vm10, %v4115_v1 }
 0x292   : > { %v2609_v48 = vadd.f32 %v5451_v13, %v2440_v52  ;;  %v2642_v39 = vadd.f32 %v5474_v51, %v2625_v21  ;;  %v2874_v52 = vrot.slane %v3368_v32, 3 }
 0x293   : > { %v2428_v18 = vpop.f32.mrf.mxu1 }
 0x294   : > { %v2626_v55 = vmul.f32 %v5467_v59, %v2609_v48  ;;  %v2441_v12 = vadd.f32 %v2428_v18, %v5462_v57  ;;  %v2652_v2 = vmax.f32 %v2642_v39, 0.0  ;;  %v3407_v48 = vld [vmem:[%s4203_s24 + $0x20] sm:$0xff]   ;;  %v2876_v18 = vrot.slane %v3369_v49, 3 }
 0x295   : > { %v3888_v4 = vpop.f32.mrf.mxu1 }
 0x296   : > { %v2610_v8 = vadd.f32 %v5456_v25, %v2441_v12  ;;  %v2658_v46 = vpack.c.bf16 %v2652_v2, %v2651_v14  ;;  %v2643_v6 = vadd.f32 %v5474_v51, %v2626_v55  ;;  %v2808_v25 = vunpack.c.l.bf16 %v2797_v44 }
 0x297   : > { %v2875_v2 = vsel %vm2463_vm7, %v2872_v47, %v2874_v52 }
 0x298   : > { %v2627_v33 = vmul.f32 %v5467_v59, %v2610_v8  ;;  %3954 = vmatmul.mubr.bf16.gmra.mxu1 %v2658_v46  ;;  %v2653_v29 = vmax.f32 %v2643_v6, 0.0  ;;  %v3361_v59 = vunpack.c.h.bf16 %v3404_v30  ;;  %v3372_v8 = vunpack.c.l.bf16 %v3407_v48 }
 0x299   : > { %3957 = vmatprep.mubr.msk.bf16.mxu1 %vm5629_vm10, %v4115_v1  ;;  %v5523_v1 = vld [vmem:[%s5583_s9] ss:$0 sm:$0xff] }
 0x29a   : > { %v2644_v13 = vadd.f32 %v5474_v51, %v2627_v33  ;;  %v2865_v51 = vrot.slane %v2808_v25, 3  ;;  %v2868_v26 = vrot.slane %v3361_v59, 3  ;;  %v2877_v33 = vsel %vm2463_vm7, %v2874_v52, %v2876_v18  ;;  %v2806_v59 = vld [vmem:[%s4203_s24 + $0x28] sm:$0xf] }
 0x29b   : > { %v2878_v30 = vrot.slane %v3372_v8, 3 }
 0x29c   : > { %v2654_v57 = vmax.f32 %v2644_v13, 0.0  ;;  %v2867_v0 = vsel %vm2463_vm7, %v2865_v51, %v2866_v60  ;;  %v2869_v27 = vsel %vm2463_vm7, %v2866_v60, %v2868_v26  ;;  %v2871_v11 = vsel %vm2463_vm7, %v2868_v26, %v2870_v3 }
 0x29d   : > { %v2879_v26 = vsel %vm2463_vm7, %v2876_v18, %v2878_v30 }
 0x29e   : > { %v2659_v35 = vpack.c.bf16 %v2654_v57, %v2653_v29  ;;  %v3373_v29 = vunpack.c.h.bf16 %v3407_v48 }
 0x2a0   : > { %3958 = vmatmul.mubr.bf16.gmra.mxu1 %v2659_v35  ;;  %v2880_v51 = vrot.slane %v3373_v29, 3 }
 0x340   : > { %v2758_v61 = vpop.f32.mrf.mxu0 }
 0x341   : > { %v2826_v17 = vmul.f32 %v5518_v16, %v2758_v61 }
 0x342   : > { %v3943_v45 = vpop.f32.mrf.mxu0 }
 0x343   : > { %v2843_v36 = vadd.f32 %v5523_v1, %v2826_v17  ;;  %v2807_v45 = vld [vmem:[%s4203_s24 + $0x2c] sm:$0x3] }
 0x344   : > { %v2761_v42 = vpop.f32.mrf.mxu0 }
 0x345   : > { %v2827_v43 = vmul.f32 %v5518_v16, %v2761_v42  ;;  %v2896_v28 = vadd.f32 %v2867_v0, %v2843_v36  ;;  %v2817_v0 = vunpack.c.l.bf16 %v2806_v59 }
 0x346   : > { %v3944_v15 = vpop.f32.mrf.mxu0 }
 0x347   : > { %v2844_v5 = vadd.f32 %v5523_v1, %v2827_v43  ;;  %v2906_v38 = vmax.f32 %v2896_v28, 0.0  ;;  %v2881_v43 = vsel %vm2463_vm7, %v2878_v30, %v2880_v51  ;;  %v2818_v15 = vunpack.c.l.bf16 %v2807_v45 }
 0x348   : > { %v2766_v31 = vpop.f32.mrf.mxu1 }
 0x349   : > { %v2897_v56 = vadd.f32 %v2869_v27, %v2844_v5  ;;  %v2828_v19 = vmul.f32 %v5518_v16, %v2766_v31  ;;  %v2882_v31 = vrot.slane %v2817_v0, 3  ;;  %v2884_v50 = vrot.slane %v2818_v15, 3 }
 0x34a   : > { %v3947_v58 = vpop.f32.mrf.mxu1 }
 0x34b   : > { %v2907_v34 = vmax.f32 %v2897_v56, 0.0  ;;  %v2845_v10 = vadd.f32 %v5523_v1, %v2828_v19  ;;  %v2885_v32 = vsel %vm2463_vm7, %v2882_v31, %v2884_v50 }
 0x34c   : > { %v2769_v63 = vpop.f32.mrf.mxu1 }
 0x34d   : > { %v3377_v53 = vpack.c.bf16 %v2907_v34, %v2906_v38  ;;  %v2829_v9 = vmul.f32 %v5518_v16, %v2769_v63  ;;  %v2898_v24 = vadd.f32 %v2871_v11, %v2845_v10  ;;  %v2883_v34 = vsel %vm2463_vm7, %v2880_v51, %v2882_v31 }
 0x34e   : > { %v3948_v7 = vpop.f32.mrf.mxu1 }
 0x34f   : > { %3378 = vst [vmem:[%s5539_s22] sm:$0xff] %v3377_v53   ;;  %v2846_v22 = vadd.f32 %v5523_v1, %v2829_v9  ;;  %v2908_v55 = vmax.f32 %v2898_v24, 0.0 }
 0x350   : > { %v2774_v21 = vpop.f32.mrf.mxu1 }
 0x351   : > { %v2899_v62 = vadd.f32 %v2873_v37, %v2846_v22  ;;  %v2830_v41 = vmul.f32 %v5518_v16, %v2774_v21 }
 0x352   : > { %v3951_v39 = vpop.f32.mrf.mxu1 }
 0x353   : > { %v2909_v12 = vmax.f32 %v2899_v62, 0.0  ;;  %v2847_v14 = vadd.f32 %v5523_v1, %v2830_v41 }
 0x354   : > { %v2777_v4 = vpop.f32.mrf.mxu1 }
 0x355   : > { %v3382_v46 = vpack.c.bf16 %v2909_v12, %v2908_v55  ;;  %v2831_v6 = vmul.f32 %v5518_v16, %v2777_v4  ;;  %v2900_v57 = vadd.f32 %v2875_v2, %v2847_v14 }
 0x356   : > { %v3952_v13 = vpop.f32.mrf.mxu1 }
 0x357   : > { %3408 = vst [vmem:[%s5539_s22 + $0x8] sm:$0xff] %v3382_v46   ;;  %v2848_v35 = vadd.f32 %v5523_v1, %v2831_v6  ;;  %v2910_v60 = vmax.f32 %v2900_v57, 0.0 }
 0x358   : > { %v2782_v44 = vpop.f32.mrf.mxu1 }
 0x359   : > { %v2901_v54 = vadd.f32 %v2877_v33, %v2848_v35  ;;  %v2832_v25 = vmul.f32 %v5518_v16, %v2782_v44 }
 0x35a   : > { %v3955_v61 = vpop.f32.mrf.mxu1 }
 0x35b   : > { %v2911_v17 = vmax.f32 %v2901_v54, 0.0  ;;  %v2849_v20 = vadd.f32 %v5523_v1, %v2832_v25 }
 0x35c   : > { %v2785_v36 = vpop.f32.mrf.mxu1 }
 0x35d   : > { %v3387_v42 = vpack.c.bf16 %v2911_v17, %v2910_v60  ;;  %v2833_v23 = vmul.f32 %v5518_v16, %v2785_v36  ;;  %v2902_v40 = vadd.f32 %v2879_v26, %v2849_v20 }
 0x35e   : > { %v3956_v27 = vpop.f32.mrf.mxu1 }
 0x35f   : > { %3409 = vst [vmem:[%s5539_s22 + $0x10] sm:$0xff] %v3387_v42   ;;  %v2850_v28 = vadd.f32 %v5523_v1, %v2833_v23  ;;  %v2912_v58 = vmax.f32 %v2902_v40, 0.0 }
 0x360   : > { %v2790_v5 = vpop.f32.mrf.mxu1 }
 0x361   : > { %v2903_v3 = vadd.f32 %v2881_v43, %v2850_v28  ;;  %v2834_v56 = vmul.f32 %v5518_v16, %v2790_v5 }
 0x362   : > { %v3959_v19 = vpop.f32.mrf.mxu1 }
 0x363   : > { %v2913_v47 = vmax.f32 %v2903_v3, 0.0  ;;  %v2851_v38 = vadd.f32 %v5523_v1, %v2834_v56 }
 0x364   : > { %v2793_v10 = vpop.f32.mrf.mxu1 }
 0x365   : > { %v3392_v11 = vpack.c.bf16 %v2913_v47, %v2912_v58  ;;  %v2835_v63 = vmul.f32 %v5518_v16, %v2793_v10  ;;  %v2904_v9 = vadd.f32 %v2883_v34, %v2851_v38 }
 0x366   : > { %v3960_v53 = vpop.f32.mrf.mxu1 }
 0x367   : > { %3410 = vst [vmem:[%s5539_s22 + $0x18] sm:$0xff] %v3392_v11   ;;  %v2852_v37 = vadd.f32 %v5523_v1, %v2835_v63  ;;  %v2914_v49 = vmax.f32 %v2904_v9, 0.0 }
 0x369   : > { %v2905_v7 = vadd.f32 %v2885_v32, %v2852_v37 }
 0x36b   : > { %v2915_v24 = vmax.f32 %v2905_v7, 0.0 }
 0x36d   : > { %v3397_v22 = vpack.c.bf16 %v2915_v24, %v2914_v49 }
 0x36f   : > { %3411 = vst [vmem:[%s5539_s22 + $0x20] sm:$0xff] %v3397_v22  }
 0x370 PF: > { %s20_s13 = sadd.s32 1, %s4113_s13  }
 0x371   : > { %p17_p4 = scmp.ge.s32.totalorder %s20_s13, 4  }
 0x373   :  { %19 = sbr.rel (!%p17_p4) target bundleno = 1 (0x1), region = 98 }

</bundles_post_ra>
